<compile_context>
chip_gen: v6e
topology: v6e:2x2x1
jax: 0.10.0
libtpu: 0.0.40
codegen_flags: <defaults>
</compile_context>

<pallas_src>
import functools

import jax
import jax.numpy as jnp
from jax.experimental import pallas as pl
from jax.experimental.pallas import tpu as pltpu

LANE = 128


def _round_up(v, m):
    return (v + m - 1) // m * m


def _actor_critic_kernel(
    x_ref,
    w1f_ref, b1f_ref,          # fused actor|critic layer 1 (S, 2*hid1)
    aw2_ref, ab2_ref,          # actor layer 2
    cw2_ref, cb2_ref,          # critic layer 2
    w3c_ref, b3c_ref,          # combined actor-L3 + critic-head (2*hid2, A_pad)
    out_ref,                   # (tb, 2*A_pad): [probs | logp/value]
    *, hid1, n_actions,
):
    wt = w1f_ref.dtype
    x = x_ref[...].astype(wt)                      # cast in-kernel, not in the wrapper

    # ---- fused layer 1: one MXU pass over the shared input (actor || critic)
    h1g1 = jnp.tanh(
        jnp.dot(x, w1f_ref[...], preferred_element_type=jnp.float32) + b1f_ref[...]
    )
    h1 = h1g1[:, :hid1].astype(wt)
    g1 = h1g1[:, hid1:].astype(wt)

    # ---- layer 2 (actor / critic)
    h2 = jnp.tanh(
        jnp.dot(h1, aw2_ref[...], preferred_element_type=jnp.float32) + ab2_ref[...]
    )
    g2 = jnp.tanh(
        jnp.dot(g1, cw2_ref[...], preferred_element_type=jnp.float32) + cb2_ref[...]
    )

    # ---- combined layer 3: actor logits land in lanes [0, A), the critic
    # value lands in lane A (bottom half of w3c carries cw3), padded lanes get
    # bias -1e9 (exact zero probability after softmax).
    h2g2 = jnp.concatenate([h2, g2], axis=-1).astype(wt)
    combined = (
        jnp.dot(h2g2, w3c_ref[...], preferred_element_type=jnp.float32) + b3c_ref[...]
    )

    lane = jax.lax.broadcasted_iota(jnp.int32, combined.shape, 1)
    is_val = lane == n_actions
    logits = jnp.where(is_val, -1e9, combined)     # mask the value lane for softmax

    m = jnp.max(logits, axis=-1, keepdims=True)
    e = jnp.exp(logits - m)
    denom = jnp.sum(e, axis=-1, keepdims=True)
    inv = pl.reciprocal(denom, approx=False)       # exact: probs sum to 1, match logp
    probs = e * inv
    logp = (logits - m) - jnp.log(denom)

    aux = jnp.where(is_val, combined, logp)        # lane A carries the critic value
    out_ref[...] = jnp.concatenate([probs, aux], axis=-1).astype(out_ref.dtype)


def pack_params(p, dtype=jnp.bfloat16):
    """Fuse/pad raw (in, out)-layout params into the kernel layout.

    Weights are cast to `dtype` (bf16 by default on all TPU generations; pass
    f32 for tight numerical checks). Biases stay f32 — all accumulation and
    elementwise math is f32 in-kernel.
    """
    S, hid1 = p["aw1"].shape
    hid2 = p["aw2"].shape[1]
    A = p["aw3"].shape[1]

    S_pad = _round_up(S, 8)                 # sublane alignment only (no lane pad)
    A_pad = _round_up(A + 1, LANE)          # +1 lane reserved for the critic value

    w1f = jnp.concatenate([p["aw1"], p["cw1"]], axis=1)
    if S_pad != S:
        w1f = jnp.zeros((S_pad, 2 * hid1), jnp.float32).at[:S].set(w1f)
    b1f = jnp.concatenate([p["ab1"], p["cb1"]], axis=1)

    # combined layer-3 weight: top half = aw3 (actor logits), bottom half puts
    # cw3 into lane A (critic value); bias lane A = cb3, padded lanes = -1e9.
    w3c = (jnp.zeros((2 * hid2, A_pad), jnp.float32)
           .at[:hid2, :A].set(p["aw3"])
           .at[hid2:, A].set(p["cw3"][:, 0]))
    b3c = (jnp.full((1, A_pad), -1e9, jnp.float32)
           .at[:, :A].set(p["ab3"])
           .at[:, A].set(p["cb3"][0, 0]))

    return dict(
        w1f=w1f.astype(dtype), b1f=b1f,
        aw2=p["aw2"].astype(dtype), ab2=p["ab2"],
        cw2=p["cw2"].astype(dtype), cb2=p["cb2"],
        w3c=w3c.astype(dtype), b3c=b3c,
    )


def _pick_tile(batch):
    # Small B: a single tiny tile (latency path, no wrapper pad needed when B
    # is a multiple of 8). Mid/large B: tiles sized so the grid has >=2
    # "parallel" steps (shards across v7x's two TensorCores) while per-step
    # VMEM stays far below every generation's scoped limit.
    if batch <= 128:
        return _round_up(batch, 8)
    if batch <= 1024:
        return 128
    if batch <= 4096:
        return 256
    return 512


@functools.partial(jax.jit, static_argnames=("action_size",))
def actor_critic_forward_padded(x, packed, *, action_size):
    """Runs the fused kernel; returns the raw lane-dense (Bp, 2*A_pad) slab.

    Layout: [:, :A]             softmax probs (padded lanes exactly 0)
            [:, A_pad:A_pad+A]  log-softmax
            [:, A_pad+A]        critic state value
    Latency-critical consumers can use this directly and skip wrapper slices.
    """
    B, S = x.shape
    S_pad, hid1x2 = packed["w1f"].shape
    hid1 = hid1x2 // 2
    hid2 = packed["aw2"].shape[1]
    A_pad = packed["w3c"].shape[1]

    tb = _pick_tile(B)
    Bp = _round_up(B, tb)

    # Only pad when strictly needed (no wrapper pad op for aligned inputs).
    if (Bp, S_pad) == (B, S):
        x_in = x
    else:
        x_in = jnp.zeros((Bp, S_pad), x.dtype).at[:B, :S].set(x)

    def full(arr):
        nd = arr.ndim
        return pl.BlockSpec(arr.shape, lambda i, nd=nd: (0,) * nd)

    param_order = ("w1f", "b1f", "aw2", "ab2", "cw2", "cb2", "w3c", "b3c")
    params = [packed[k] for k in param_order]

    in_specs = [pl.BlockSpec((tb, S_pad), lambda i: (i, 0))] + [full(a) for a in params]
    out_specs = pl.BlockSpec((tb, 2 * A_pad), lambda i: (i, 0))

    # Cost estimate: the kernel is EUP (tanh/exp) + weight-DMA bound; MXU work
    # is tiny by design, so no MXU tile-shape tuning is attempted.
    flops_per_row = (
        2 * S_pad * (2 * hid1)        # fused layer 1
        + 2 * (2 * hid1 * hid2)       # actor + critic layer 2
        + 2 * (2 * hid2) * A_pad      # combined layer 3 + critic head
    )
    transc_per_row = 2 * hid1 + 2 * hid2 + A_pad + 2
    bytes_accessed = (
        x_in.size * x_in.dtype.itemsize
        + sum(a.size * a.dtype.itemsize for a in params) * (Bp // tb)
        + Bp * 2 * A_pad * 4
    )

    out = pl.pallas_call(
        functools.partial(_actor_critic_kernel, hid1=hid1, n_actions=action_size),
        out_shape=jax.ShapeDtypeStruct((Bp, 2 * A_pad), jnp.float32),
        grid_spec=pltpu.PrefetchScalarGridSpec(
            num_scalar_prefetch=0,
            grid=(Bp // tb,),
            in_specs=in_specs,
            out_specs=out_specs,
        ),
        compiler_params=pltpu.CompilerParams(
            dimension_semantics=("parallel",),
            vmem_limit_bytes=32 * 1024 * 1024,
        ),
        cost_estimate=pl.CostEstimate(
            flops=Bp * flops_per_row,
            transcendentals=Bp * transc_per_row,
            bytes_accessed=bytes_accessed,
        ),
    )(x_in, *params)
    return out


@functools.partial(jax.jit, static_argnames=("action_size",))
def actor_critic_forward(x, packed, *, action_size):
    """Returns (action_probs (B, A), state_value (B, 1), log_probs (B, A))."""
    out = actor_critic_forward_padded(x, packed, action_size=action_size)
    B = x.shape[0]
    A_pad = packed["w3c"].shape[1]
    probs = out[:B, :action_size]
    logp = out[:B, A_pad:A_pad + action_size]
    value = out[:B, A_pad + action_size:A_pad + action_size + 1]
    return probs, value, logp


def evaluate(x, actions, packed, action_size):
    """Mirrors ActorCriticModel.evaluate: (log_probs, squeezed value, entropy)."""
    probs, value, logp = actor_critic_forward(x, packed, action_size=action_size)
    action_logprobs = jnp.take_along_axis(logp, actions[:, None], axis=-1)[:, 0]
    entropy = -jnp.sum(probs * logp, axis=-1)
    return action_logprobs, jnp.squeeze(value, axis=-1), entropy


def init_params(key, state_size, action_size, hid1=512, hid2=256):
    """PyTorch-style uniform(-1/sqrt(fan_in), 1/sqrt(fan_in)) init, deterministic."""
    def linear(k, fan_in, fan_out):
        kw, kb = jax.random.split(k)
        bound = 1.0 / jnp.sqrt(jnp.float32(fan_in))
        w = jax.random.uniform(kw, (fan_in, fan_out), jnp.float32, -bound, bound)
        b = jax.random.uniform(kb, (1, fan_out), jnp.float32, -bound, bound)
        return w, b

    keys = jax.random.split(key, 6)
    aw1, ab1 = linear(keys[0], state_size, hid1)
    aw2, ab2 = linear(keys[1], hid1, hid2)
    aw3, ab3 = linear(keys[2], hid2, action_size)
    cw1, cb1 = linear(keys[3], state_size, hid1)
    cw2, cb2 = linear(keys[4], hid1, hid2)
    cw3, cb3 = linear(keys[5], hid2, 1)
    return dict(
        aw1=aw1, ab1=ab1, aw2=aw2, ab2=ab2, aw3=aw3, ab3=ab3,
        cw1=cw1, cb1=cb1, cw2=cw2, cb2=cb2, cw3=cw3, cb3=cb3,
    )


def reference_forward(x, p):
    """Pure-JAX reference for numerical sanity check."""
    h = jnp.tanh(x @ p["aw1"] + p["ab1"])
    h = jnp.tanh(h @ p["aw2"] + p["ab2"])
    logits = h @ p["aw3"] + p["ab3"]
    probs = jax.nn.softmax(logits, axis=-1)
    logp = jax.nn.log_softmax(logits, axis=-1)
    g = jnp.tanh(x @ p["cw1"] + p["cb1"])
    g = jnp.tanh(g @ p["cw2"] + p["cb2"])
    value = g @ p["cw3"] + p["cb3"]
    return probs, value, logp


if __name__ == "__main__":
    state_size = 32     # small synthetic state
    action_size = 5     # flatland action space
    batch = 8

    key = jax.random.PRNGKey(0)
    k_params, k_x, k_act, k_x2 = jax.random.split(key, 4)

    params = init_params(k_params, state_size, action_size)
    x = jax.random.normal(k_x, (batch, state_size), jnp.float32)
    actions = jax.random.randint(k_act, (batch,), 0, action_size)

    probs_ref, value_ref, logp_ref = reference_forward(x, params)

    # ---- f32 weight path: tight check against the pure-JAX reference ----
    packed_f32 = pack_params(params, jnp.float32)
    probs, value, logp = actor_critic_forward(x, packed_f32, action_size=action_size)
    jax.block_until_ready((probs, value, logp))
    assert jnp.allclose(probs, probs_ref, atol=3e-3, rtol=3e-3), "probs mismatch (f32)"
    assert jnp.allclose(value, value_ref, atol=5e-4, rtol=5e-4), "value mismatch (f32)"
    assert jnp.allclose(logp, logp_ref, atol=3e-3, rtol=3e-3), "logp mismatch (f32)"
    assert jnp.allclose(jnp.sum(probs, axis=-1), 1.0, atol=1e-4), "probs do not sum to 1"

    # exercise evaluate() path (log_prob / entropy / squeezed value)
    alp, v, ent = evaluate(x, actions, packed_f32, action_size)
    jax.block_until_ready((alp, v, ent))

    # ---- default bf16 weight path (all TPU generations), small batch ----
    packed_bf16 = pack_params(params)
    probs_b, value_b, logp_b = actor_critic_forward(x, packed_bf16, action_size=action_size)
    jax.block_until_ready((probs_b, value_b, logp_b))
    assert jnp.allclose(probs_b, probs_ref, atol=3e-2, rtol=3e-2), "probs mismatch (bf16)"
    assert jnp.allclose(value_b, value_ref, atol=5e-2, rtol=5e-2), "value mismatch (bf16)"
    assert jnp.allclose(jnp.sum(probs_b, axis=-1), 1.0, atol=1e-4), "bf16 probs not normalized"

    # ---- mid-size batch: exercises the multi-step ("parallel") grid path ----
    x2 = jax.random.normal(k_x2, (256, state_size), jnp.float32)
    p2_ref, v2_ref, _ = reference_forward(x2, params)
    p2, v2, _ = actor_critic_forward(x2, packed_bf16, action_size=action_size)
    jax.block_until_ready((p2, v2))
    assert jnp.allclose(p2, p2_ref, atol=5e-2, rtol=5e-2), "probs mismatch (bf16, B=256)"
    assert jnp.allclose(v2, v2_ref, atol=1e-1, rtol=1e-1), "value mismatch (bf16, B=256)"

    # TODO(synk): optional further fusion — pass `actions` via scalar prefetch and
    # emit chosen-action log-prob / entropy / value in-kernel for the PPO update path.

    print("KERNEL_OK")
</pallas_src>

<mosaic_0001>
module attributes {stable_mosaic.version = 11 : i64} {
  func.func @_actor_critic_kernel(%arg0: i32, %arg1: memref<8x32xf32, #tpu.memory_space<vmem>>, %arg2: memref<32x1024xf32, #tpu.memory_space<vmem>>, %arg3: memref<1x1024xf32, #tpu.memory_space<vmem>>, %arg4: memref<512x256xf32, #tpu.memory_space<vmem>>, %arg5: memref<1x256xf32, #tpu.memory_space<vmem>>, %arg6: memref<512x256xf32, #tpu.memory_space<vmem>>, %arg7: memref<1x256xf32, #tpu.memory_space<vmem>>, %arg8: memref<512x128xf32, #tpu.memory_space<vmem>>, %arg9: memref<1x128xf32, #tpu.memory_space<vmem>>, %arg10: memref<8x256xf32, #tpu.memory_space<vmem>>) attributes {dimension_semantics = [#tpu.dimension_semantics<parallel>], iteration_bounds = array<i64: 1>, scalar_prefetch = 0 : i64, scratch_operands = 0 : i64, tpu.core_type = #tpu.core_type<tc>, window_params = [{transform_indices = @transform_0, window_bounds = array<i64: 8, 32>}, {pipeline_mode = #tpu.pipeline_mode<synchronous>, transform_indices = @transform_1, window_bounds = array<i64: 32, 1024>}, {pipeline_mode = #tpu.pipeline_mode<synchronous>, transform_indices = @transform_2, window_bounds = array<i64: 1, 1024>}, {pipeline_mode = #tpu.pipeline_mode<synchronous>, transform_indices = @transform_3, window_bounds = array<i64: 512, 256>}, {pipeline_mode = #tpu.pipeline_mode<synchronous>, transform_indices = @transform_4, window_bounds = array<i64: 1, 256>}, {pipeline_mode = #tpu.pipeline_mode<synchronous>, transform_indices = @transform_5, window_bounds = array<i64: 512, 256>}, {pipeline_mode = #tpu.pipeline_mode<synchronous>, transform_indices = @transform_6, window_bounds = array<i64: 1, 256>}, {pipeline_mode = #tpu.pipeline_mode<synchronous>, transform_indices = @transform_7, window_bounds = array<i64: 512, 128>}, {pipeline_mode = #tpu.pipeline_mode<synchronous>, transform_indices = @transform_8, window_bounds = array<i64: 1, 128>}, {transform_indices = @transform_9, window_bounds = array<i64: 8, 256>}]} {
    %c0 = arith.constant 0 : index
    %c0_0 = arith.constant 0 : index
    %0 = vector.load %arg1[%c0, %c0_0] : memref<8x32xf32, #tpu.memory_space<vmem>>, vector<8x32xf32>
    %c0_1 = arith.constant 0 : index
    %c0_2 = arith.constant 0 : index
    %1 = vector.load %arg2[%c0_1, %c0_2] : memref<32x1024xf32, #tpu.memory_space<vmem>>, vector<32x1024xf32>
    %cst = arith.constant dense<0.000000e+00> : vector<8x1024xf32>
    %2 = tpu.matmul %0, %1, %cst {dimension_numbers = #tpu.dot_dimension_numbers<[1], [0], [0], [1], [0, 0, 1, 1], [], []>} : vector<8x32xf32>, vector<32x1024xf32>, vector<8x1024xf32> -> vector<8x1024xf32>
    %c0_3 = arith.constant 0 : index
    %c0_4 = arith.constant 0 : index
    %3 = vector.load %arg3[%c0_3, %c0_4] : memref<1x1024xf32, #tpu.memory_space<vmem>>, vector<1x1024xf32>
    %4 = vector.broadcast %3 : vector<1x1024xf32> to vector<8x1024xf32>
    %5 = arith.addf %2, %4 : vector<8x1024xf32>
    %6 = math.tanh %5 : vector<8x1024xf32>
    %7 = vector.extract_strided_slice %6 {offsets = [0, 0], sizes = [8, 512], strides = [1, 1]} : vector<8x1024xf32> to vector<8x512xf32>
    %8 = vector.extract_strided_slice %6 {offsets = [0, 512], sizes = [8, 512], strides = [1, 1]} : vector<8x1024xf32> to vector<8x512xf32>
    %c0_5 = arith.constant 0 : index
    %c0_6 = arith.constant 0 : index
    %9 = vector.load %arg4[%c0_5, %c0_6] : memref<512x256xf32, #tpu.memory_space<vmem>>, vector<512x256xf32>
    %cst_7 = arith.constant dense<0.000000e+00> : vector<8x256xf32>
    %10 = tpu.matmul %7, %9, %cst_7 {dimension_numbers = #tpu.dot_dimension_numbers<[1], [0], [0], [1], [0, 0, 1, 1], [], []>} : vector<8x512xf32>, vector<512x256xf32>, vector<8x256xf32> -> vector<8x256xf32>
    %c0_8 = arith.constant 0 : index
    %c0_9 = arith.constant 0 : index
    %11 = vector.load %arg5[%c0_8, %c0_9] : memref<1x256xf32, #tpu.memory_space<vmem>>, vector<1x256xf32>
    %12 = vector.broadcast %11 : vector<1x256xf32> to vector<8x256xf32>
    %13 = arith.addf %10, %12 : vector<8x256xf32>
    %14 = math.tanh %13 : vector<8x256xf32>
    %c0_10 = arith.constant 0 : index
    %c0_11 = arith.constant 0 : index
    %15 = vector.load %arg6[%c0_10, %c0_11] : memref<512x256xf32, #tpu.memory_space<vmem>>, vector<512x256xf32>
    %cst_12 = arith.constant dense<0.000000e+00> : vector<8x256xf32>
    %16 = tpu.matmul %8, %15, %cst_12 {dimension_numbers = #tpu.dot_dimension_numbers<[1], [0], [0], [1], [0, 0, 1, 1], [], []>} : vector<8x512xf32>, vector<512x256xf32>, vector<8x256xf32> -> vector<8x256xf32>
    %c0_13 = arith.constant 0 : index
    %c0_14 = arith.constant 0 : index
    %17 = vector.load %arg7[%c0_13, %c0_14] : memref<1x256xf32, #tpu.memory_space<vmem>>, vector<1x256xf32>
    %18 = vector.broadcast %17 : vector<1x256xf32> to vector<8x256xf32>
    %19 = arith.addf %16, %18 : vector<8x256xf32>
    %20 = math.tanh %19 : vector<8x256xf32>
    %21 = tpu.concatenate %14, %20 in 1 : vector<8x256xf32>, vector<8x256xf32> -> vector<8x512xf32>
    %c0_15 = arith.constant 0 : index
    %c0_16 = arith.constant 0 : index
    %22 = vector.load %arg8[%c0_15, %c0_16] : memref<512x128xf32, #tpu.memory_space<vmem>>, vector<512x128xf32>
    %cst_17 = arith.constant dense<0.000000e+00> : vector<8x128xf32>
    %23 = tpu.matmul %21, %22, %cst_17 {dimension_numbers = #tpu.dot_dimension_numbers<[1], [0], [0], [1], [0, 0, 1, 1], [], []>} : vector<8x512xf32>, vector<512x128xf32>, vector<8x128xf32> -> vector<8x128xf32>
    %c0_18 = arith.constant 0 : index
    %c0_19 = arith.constant 0 : index
    %24 = vector.load %arg9[%c0_18, %c0_19] : memref<1x128xf32, #tpu.memory_space<vmem>>, vector<1x128xf32>
    %25 = vector.broadcast %24 : vector<1x128xf32> to vector<8x128xf32>
    %26 = arith.addf %23, %25 : vector<8x128xf32>
    %27 = tpu.iota {dimensions = array<i32: 1>} : vector<8x128xi32>
    %c5_i32 = arith.constant 5 : i32
    %28 = vector.broadcast %c5_i32 : i32 to vector<8x128xi32>
    %29 = arith.cmpi eq, %27, %28 : vector<8x128xi32>
    %cst_20 = arith.constant -1.000000e+09 : f32
    %30 = vector.broadcast %cst_20 : f32 to vector<8x128xf32>
    %31 = arith.select %29, %30, %26 : vector<8x128xi1>, vector<8x128xf32>
    %cst_21 = arith.constant dense<0xFF800000> : vector<8xf32>
    %32 = vector.multi_reduction <maximumf>, %31, %cst_21 [1] : vector<8x128xf32> to vector<8xf32>
    %33 = vector.shape_cast %32 : vector<8xf32> to vector<8x1xf32>
    %34 = vector.broadcast %33 : vector<8x1xf32> to vector<8x128xf32>
    %35 = arith.subf %31, %34 : vector<8x128xf32>
    %36 = math.exp %35 : vector<8x128xf32>
    %cst_22 = arith.constant dense<0.000000e+00> : vector<8xf32>
    %37 = vector.multi_reduction <add>, %36, %cst_22 [1] : vector<8x128xf32> to vector<8xf32>
    %38 = vector.shape_cast %37 : vector<8xf32> to vector<8x1xf32>
    %39 = tpu.reciprocal %38 : vector<8x1xf32> -> vector<8x1xf32>
    %40 = vector.broadcast %39 : vector<8x1xf32> to vector<8x128xf32>
    %41 = arith.mulf %36, %40 : vector<8x128xf32>
    %42 = vector.broadcast %33 : vector<8x1xf32> to vector<8x128xf32>
    %43 = arith.subf %31, %42 : vector<8x128xf32>
    %44 = math.log %38 : vector<8x1xf32>
    %45 = vector.broadcast %44 : vector<8x1xf32> to vector<8x128xf32>
    %46 = arith.subf %43, %45 : vector<8x128xf32>
    %47 = arith.select %29, %26, %46 : vector<8x128xi1>, vector<8x128xf32>
    %48 = tpu.concatenate %41, %47 in 1 : vector<8x128xf32>, vector<8x128xf32> -> vector<8x256xf32>
    %c0_23 = arith.constant 0 : index
    %c0_24 = arith.constant 0 : index
    %49 = vector.load %arg10[%c0_23, %c0_24] : memref<8x256xf32, #tpu.memory_space<vmem>>, vector<8x256xf32>
    tpu.vector_store %arg10[%c0_23, %c0_24], %48 {strides = array<i32>} : memref<8x256xf32, #tpu.memory_space<vmem>>, vector<8x256xf32>,
    return
  }
  func.func @transform_0(%arg0: i32) -> (i32, i32) {
    %c0_i32 = arith.constant 0 : i32
    %c0_i32_0 = arith.constant 0 : i32
    return %arg0, %c0_i32 : i32, i32
  }
  func.func @transform_1(%arg0: i32) -> (i32, i32) {
    %c0_i32 = arith.constant 0 : i32
    %c0_i32_0 = arith.constant 0 : i32
    %c0_i32_1 = arith.constant 0 : i32
    return %c0_i32, %c0_i32_0 : i32, i32
  }
  func.func @transform_2(%arg0: i32) -> (i32, i32) {
    %c0_i32 = arith.constant 0 : i32
    %c0_i32_0 = arith.constant 0 : i32
    %c0_i32_1 = arith.constant 0 : i32
    return %c0_i32, %c0_i32_0 : i32, i32
  }
  func.func @transform_3(%arg0: i32) -> (i32, i32) {
    %c0_i32 = arith.constant 0 : i32
    %c0_i32_0 = arith.constant 0 : i32
    %c0_i32_1 = arith.constant 0 : i32
    return %c0_i32, %c0_i32_0 : i32, i32
  }
  func.func @transform_4(%arg0: i32) -> (i32, i32) {
    %c0_i32 = arith.constant 0 : i32
    %c0_i32_0 = arith.constant 0 : i32
    %c0_i32_1 = arith.constant 0 : i32
    return %c0_i32, %c0_i32_0 : i32, i32
  }
  func.func @transform_5(%arg0: i32) -> (i32, i32) {
    %c0_i32 = arith.constant 0 : i32
    %c0_i32_0 = arith.constant 0 : i32
    %c0_i32_1 = arith.constant 0 : i32
    return %c0_i32, %c0_i32_0 : i32, i32
  }
  func.func @transform_6(%arg0: i32) -> (i32, i32) {
    %c0_i32 = arith.constant 0 : i32
    %c0_i32_0 = arith.constant 0 : i32
    %c0_i32_1 = arith.constant 0 : i32
    return %c0_i32, %c0_i32_0 : i32, i32
  }
  func.func @transform_7(%arg0: i32) -> (i32, i32) {
    %c0_i32 = arith.constant 0 : i32
    %c0_i32_0 = arith.constant 0 : i32
    %c0_i32_1 = arith.constant 0 : i32
    return %c0_i32, %c0_i32_0 : i32, i32
  }
  func.func @transform_8(%arg0: i32) -> (i32, i32) {
    %c0_i32 = arith.constant 0 : i32
    %c0_i32_0 = arith.constant 0 : i32
    %c0_i32_1 = arith.constant 0 : i32
    return %c0_i32, %c0_i32_0 : i32, i32
  }
  func.func @transform_9(%arg0: i32) -> (i32, i32) {
    %c0_i32 = arith.constant 0 : i32
    %c0_i32_0 = arith.constant 0 : i32
    return %arg0, %c0_i32 : i32, i32
  }
}

</mosaic_0001>

<bundles_post_ra>
// kernel: actor_critic_forward_padded.1
= control target key start
LH: loop header
LB: loop body
LE: loop exit
PB: predicated region body
PF: predicated region fallthrough
CT: control target
= control target key end

     0   :  { %14 = vsyncpa [#allocation3], 0  ;;  %s1736_s0 = inlined_call_operand.hbm [shape: f32[8,32], index: 0, kind: input, shape index: {}]   ;;  %s1737_s1 = inlined_call_operand.hbm [shape: f32[32,1024], index: 1, kind: input, shape index: {}]   ;;  %s1738_s2 = inlined_call_operand.hbm [shape: f32[1,1024], index: 2, kind: input, shape index: {}]   ;;  %s1739_s3 = inlined_call_operand.hbm [shape: f32[512,256], index: 3, kind: input, shape index: {}]   ;;  %s1740_s4 = inlined_call_operand.hbm [shape: f32[1,256], index: 4, kind: input, shape index: {}]   ;;  %s1741_s5 = inlined_call_operand.hbm [shape: f32[512,256], index: 5, kind: input, shape index: {}]   ;;  %s1742_s6 = inlined_call_operand.vmem [shape: f32[1,256], index: 6, kind: input, shape index: {}]   ;;  %s1743_s7 = inlined_call_operand.hbm [shape: f32[512,128], index: 7, kind: input, shape index: {}]   ;;  %s1744_s8 = inlined_call_operand.vmem [shape: f32[1,128], index: 8, kind: input, shape index: {}]   ;;  %s1745_s9 = inlined_call_operand.hbm [shape: f32[8,256], index: 9, kind: output, shape index: {}]  }
   0x1   :  { %15 = vsyncpa [#allocation6], 0 }
   0x2   :  { %16 = vsyncpa [#allocation9], 0 }
   0x3   :  { %17 = vsyncpa [#allocation12], 0 }
   0x4   :  { %18 = vsyncpa [#allocation4], 0  ;;  %s1599_s30 = smov [#allocation5]  }
   0x5   :  { %s34_s10 = sshll.u32 %s1599_s30, 4  ;;  %s35_s10 = int_to_ptr.vmem [resolvable:$true] %s34_s10 }
   0x6   :  { %s1437_s11 = scalar_lea.vmem %s35_s10, 4096  ;;  %p1442_p1 = scmp.lt.s32.totalorder %s35_s10, %s35_s10 }
   0x7   :  { %p1438_p0 = scmp.ne.s32.totalorder %s35_s10, %s1437_s11  ;;  %p1443_p2 = scmp.lt.s32.totalorder %s1437_s11, %s1437_s11 }
   0x9   :  { %p1444_p3 = por %p1443_p2, %p1442_p1 }
   0xb   :  { %p1445_p4 = pnand %p1444_p3, %p1438_p0 }
   0xd   :  { %1448 = shalt.err (!%p1445_p4)
}
   0xe   :  { %s1600_s12 = smov 1024   ;;  %s1601_s13 = smov 64  }
   0xf   :  { %40 = dma.hbm_to_vmem [thread:$0]  %s1737_s1, 4096, %s35_s10, [#allocation6], %s1600_s12, %s1600_s12, %s1601_s13  }
  0x10   :  { %s1602_s16 = smov [#allocation8]  }
  0x11   :  { %s56_s17 = sshll.u32 %s1602_s16, 4  ;;  %s57_s17 = int_to_ptr.vmem [resolvable:$true] %s56_s17 }
  0x12   :  { %s1457_s18 = scalar_lea.vmem %s57_s17, 16384  ;;  %p1462_p6 = scmp.lt.s32.totalorder %s57_s17, %s57_s17 }
  0x13   :  { %p1458_p5 = scmp.ne.s32.totalorder %s57_s17, %s1457_s18  ;;  %p1463_p7 = scmp.lt.s32.totalorder %s1457_s18, %s1457_s18 }
  0x15   :  { %p1464_p8 = por %p1463_p7, %p1462_p6 }
  0x17   :  { %p1465_p9 = pnand %p1464_p8, %p1458_p5 }
  0x19   :  { %1468 = shalt.err (!%p1465_p9)
}
  0x1a   :  { %s1603_s19 = smov 256   ;;  %s1604_s20 = smov 16  }
  0x1b   :  { %62 = dma.hbm_to_vmem [thread:$0]  %s1739_s3, 16384, %s57_s17, [#allocation9], %s1603_s19, %s1603_s19, %s1604_s20  }
  0x1c   :  { %s1605_s23 = smov [#allocation11]   ;;  %s1606_s25 = smov [#allocation2]  }
  0x1d   :  { %s78_s24 = sshll.u32 %s1605_s23, 4  ;;  %s25_s1 = sshll.u32 %s1606_s25, 4  ;;  %s79_s24 = int_to_ptr.vmem [resolvable:$true] %s78_s24  ;;  %s26_s1 = int_to_ptr.vmem [resolvable:$true] %s25_s1 }
  0x1e   :  { %s1477_s26 = scalar_lea.vmem %s79_s24, 16384  ;;  %p1482_p11 = scmp.lt.s32.totalorder %s79_s24, %s79_s24 }
  0x1f   :  { %p1478_p10 = scmp.ne.s32.totalorder %s79_s24, %s1477_s26  ;;  %p1483_p12 = scmp.lt.s32.totalorder %s1477_s26, %s1477_s26 }
  0x21   :  { %p1484_p13 = por %p1483_p12, %p1482_p11 }
  0x23   :  { %p1485_p0 = pnand %p1484_p13, %p1478_p10 }
  0x25   :  { %1488 = shalt.err (!%p1485_p0)
}
  0x26   :  { %84 = dma.hbm_to_vmem [thread:$0]  %s1741_s5, 16384, %s79_s24, [#allocation12], %s1603_s19, %s1603_s19, %s1604_s20  }
  0x27   :  { %s1497_s29 = scalar_lea.vmem %s26_s1, 128  ;;  %p1502_p2 = scmp.lt.s32.totalorder %s26_s1, %s26_s1 }
  0x28   :  { %p1498_p1 = scmp.ne.s32.totalorder %s26_s1, %s1497_s29  ;;  %p1503_p3 = scmp.lt.s32.totalorder %s1497_s29, %s1497_s29 }
  0x2a   :  { %p1504_p4 = por %p1503_p3, %p1502_p2 }
  0x2c   :  { %p1505_p5 = pnand %p1504_p4, %p1498_p1 }
  0x2e   :  { %1508 = shalt.err (!%p1505_p5)
}
  0x2f   :  { %28 = dma.hbm_to_vmem [thread:$0]  %s1736_s0, 128, %s26_s1, [#allocation3]  }
  0x30   :  { %s1607_s10 = smov [#allocation7]   ;;  %s1608_s12 = smov [#allocation10]  }
  0x31   :  { %s47_s11 = sshll.u32 %s1607_s10, 4  ;;  %s69_s13 = sshll.u32 %s1608_s12, 4  ;;  %s48_s11 = int_to_ptr.vmem [resolvable:$true] %s47_s11  ;;  %s70_s13 = int_to_ptr.vmem [resolvable:$true] %s69_s13 }
  0x32   :  { %s1517_s14 = scalar_lea.vmem %s48_s11, 128  ;;  %p1522_p7 = scmp.lt.s32.totalorder %s48_s11, %s48_s11 }
  0x33   :  { %p1518_p6 = scmp.ne.s32.totalorder %s48_s11, %s1517_s14  ;;  %p1523_p8 = scmp.lt.s32.totalorder %s1517_s14, %s1517_s14 }
  0x35   :  { %p1524_p9 = por %p1523_p8, %p1522_p7 }
  0x37   :  { %p1525_p10 = pnand %p1524_p9, %p1518_p6 }
  0x39   :  { %1528 = shalt.err (!%p1525_p10)
}
  0x3a   :  { %50 = dma.hbm_to_vmem [thread:$0]  %s1738_s2, 128, %s48_s11, [#allocation6]  }
  0x3b   :  { %s1537_s16 = scalar_lea.vmem %s70_s13, 32  ;;  %p1542_p12 = scmp.lt.s32.totalorder %s70_s13, %s70_s13 }
  0x3c   :  { %p1538_p11 = scmp.ne.s32.totalorder %s70_s13, %s1537_s16  ;;  %p1543_p13 = scmp.lt.s32.totalorder %s1537_s16, %s1537_s16 }
  0x3e   :  { %p1544_p0 = por %p1543_p13, %p1542_p12 }
  0x40   :  { %p1545_p1 = pnand %p1544_p0, %p1538_p11 }
  0x42   :  { %1548 = shalt.err (!%p1545_p1)
}
  0x43   :  { %72 = dma.hbm_to_vmem [thread:$0]  %s1740_s4, 32, %s70_s13, [#allocation9]  }
  0x44   :  { %s1609_s18 = smov [#allocation13]  }
  0x45   :  { %s92_s19 = sshll.u32 %s1609_s18, 4  ;;  %s93_s19 = int_to_ptr.vmem [resolvable:$true] %s92_s19 }
  0x46   :  { %s1557_s20 = scalar_lea.vmem %s93_s19, 8192  ;;  %p1562_p3 = scmp.lt.s32.totalorder %s93_s19, %s93_s19 }
  0x47   :  { %p1558_p2 = scmp.ne.s32.totalorder %s93_s19, %s1557_s20  ;;  %p1563_p4 = scmp.lt.s32.totalorder %s1557_s20, %s1557_s20 }
  0x49   :  { %p1564_p5 = por %p1563_p4, %p1562_p3 }
  0x4b   :  { %p1565_p6 = pnand %p1564_p5, %p1558_p2 }
  0x4d   :  { %1568 = shalt.err (!%p1565_p6)
}
  0x4e   :  { %s1610_s2 = smov 128   ;;  %s1611_s21 = smov 8  }
  0x4f   :  { %98 = dma.hbm_to_vmem [thread:$0]  %s1743_s7, 8192, %s93_s19, [#allocation12], %s1610_s2, %s1610_s2, %s1611_s21  }
  0x50   :  { %1589 = dma.done.wait [#allocation3], 128  }
  0x51   :  { %1590 = vsyncadd [#allocation3], 4294967168 }
  0x52   :  { %1591 = dma.done.wait [#allocation6], 4224  }
  0x53   :  { %1592 = vsyncadd [#allocation6], 4294963072 }
  0x54   :  { %1593 = dma.done.wait [#allocation9], 16416  }
  0x55   :  { %1594 = vsyncadd [#allocation9], 4294950880 }
  0x56   :  { %1595 = dma.done.wait [#allocation12], 24576  }
  0x57   :  { %1596 = vsyncadd [#allocation12], 4294942720  ;;  %v1612_v0 = vmov 0.0   ;;  %v148_v1 = vld [vmem:[#allocation5 + $0xc8] sm:$0xff]  ;;  %v150_v2 = vld [vmem:[#allocation5 + $0xd8] sm:$0xff]  ;;  %vm197_vm0 = vcmask 261120  }
  0x58   :  { %265 = vmatprep.mubr.f32.mxu0 %v1612_v0  ;;  %336 = vmatprep.mubr.f32.mxu1 %v1612_v0  ;;  %v147_v3 = vld [vmem:[#allocation5 + $0xc0] sm:$0xff]  ;;  %v149_v4 = vld [vmem:[#allocation5 + $0xd0] sm:$0xff]  ;;  %v140_v5 = vld [vmem:[#allocation5 + $0x88] sm:$0xff] }
  0x59   :  { %225 = vmatprep.subr.mxu0 %v148_v1  ;;  %296 = vmatprep.subr.mxu1 %v150_v2  ;;  %v142_v6 = vld [vmem:[#allocation5 + $0x98] sm:$0xff]  ;;  %v139_v7 = vld [vmem:[#allocation5 + $0x80] sm:$0xff]  ;;  %v141_v8 = vld [vmem:[#allocation5 + $0x90] sm:$0xff] }
  0x5a   :  { %226 = vmatpush1.msra.mxu0 %v147_v3  ;;  %297 = vmatpush1.msra.mxu1 %v149_v4  ;;  %v132_v9 = vld [vmem:[#allocation5 + $0x48] sm:$0xff]  ;;  %v134_v10 = vld [vmem:[#allocation5 + $0x58] sm:$0xff]  ;;  %v131_v11 = vld [vmem:[#allocation5 + $0x40] sm:$0xff] }
  0x5b   :  { %227 = vmatprep.subr.mxu0 %v140_v5  ;;  %298 = vmatprep.subr.mxu1 %v142_v6  ;;  %v133_v12 = vld [vmem:[#allocation5 + $0x50] sm:$0xff]  ;;  %v124_v13 = vld [vmem:[#allocation5 + $0x8] sm:$0xff]  ;;  %v126_v14 = vld [vmem:[#allocation5 + $0x18] sm:$0xff] }
  0x5c   :  { %228 = vmatpush1.msra.mxu0 %v139_v7  ;;  %299 = vmatpush1.msra.mxu1 %v141_v8  ;;  %v123_v15 = vld [vmem:[#allocation5] sm:$0xff]  ;;  %v125_v16 = vld [vmem:[#allocation5 + $0x10] sm:$0xff]  ;;  %v122_v17 = vld [vmem:[#allocation2] sm:$0xff] }
  0x5d   :  { %229 = vmatprep.subr.mxu0 %v132_v9  ;;  %300 = vmatprep.subr.mxu1 %v134_v10  ;;  %v152_v18 = vld [vmem:[#allocation5 + $0xe8] sm:$0xff]  ;;  %v154_v19 = vld [vmem:[#allocation5 + $0xf8] sm:$0xff]  ;;  %v151_v20 = vld [vmem:[#allocation5 + $0xe0] sm:$0xff] }
  0x5e   :  { %230 = vmatpush1.msra.mxu0 %v131_v11  ;;  %301 = vmatpush1.msra.mxu1 %v133_v12  ;;  %v153_v21 = vld [vmem:[#allocation5 + $0xf0] sm:$0xff]  ;;  %v144_v22 = vld [vmem:[#allocation5 + $0xa8] sm:$0xff]  ;;  %v146_v23 = vld [vmem:[#allocation5 + $0xb8] sm:$0xff] }
  0x5f   :  { %231 = vmatprep.subr.mxu0 %v124_v13  ;;  %302 = vmatprep.subr.mxu1 %v126_v14  ;;  %v143_v24 = vld [vmem:[#allocation5 + $0xa0] sm:$0xff]  ;;  %v145_v25 = vld [vmem:[#allocation5 + $0xb0] sm:$0xff]  ;;  %v136_v26 = vld [vmem:[#allocation5 + $0x68] sm:$0xff] }
  0x60   :  { %232 = vmatpush1.msra.mxu0 %v123_v15  ;;  %303 = vmatpush1.msra.mxu1 %v125_v16  ;;  %v138_v27 = vld [vmem:[#allocation5 + $0x78] sm:$0xff]  ;;  %v135_v28 = vld [vmem:[#allocation5 + $0x60] sm:$0xff]  ;;  %v128_v29 = vld [vmem:[#allocation5 + $0x28] sm:$0xff] }
  0x61   :  { %1309 = vmatmul.mubr.msk.f32.vlgmr.msra.gmra.mxu0 %vm197_vm0, %v122_v17  ;;  %1310 = vmatmul.mubr.msk.f32.vlgmr.msra.gmra.mxu1 %vm197_vm0, %v122_v17  ;;  %v137_v30 = vld [vmem:[#allocation5 + $0x70] sm:$0xff]  ;;  %v127_v31 = vld [vmem:[#allocation5 + $0x20] sm:$0xff]  ;;  %v130_v32 = vld [vmem:[#allocation5 + $0x38] sm:$0xff] }
  0x62   :  { %367 = vmatprep.subr.mxu0 %v152_v18  ;;  %438 = vmatprep.subr.mxu1 %v154_v19  ;;  %v129_v33 = vld [vmem:[#allocation5 + $0x30] sm:$0xff]  ;;  %v524_v34 = vld [vmem:[#allocation8 + $0xf8] sm:$0xff]  ;;  %v523_v36 = vld [vmem:[#allocation8 + $0xf0] sm:$0xff] }
  0x63   :  { %368 = vmatpush1.msra.mxu0 %v151_v20  ;;  %439 = vmatpush1.msra.mxu1 %v153_v21  ;;  %v588_v35 = vld [vmem:[#allocation8 + $0x2f8] sm:$0xff]  ;;  %v587_v37 = vld [vmem:[#allocation8 + $0x2f0] sm:$0xff]  ;;  %v522_v38 = vld [vmem:[#allocation8 + $0xe8] sm:$0xff] }
  0x64   :  { %369 = vmatprep.subr.mxu0 %v144_v22  ;;  %440 = vmatprep.subr.mxu1 %v146_v23  ;;  %v586_v39 = vld [vmem:[#allocation8 + $0x2e8] sm:$0xff]  ;;  %v521_v40 = vld [vmem:[#allocation8 + $0xe0] sm:$0xff]  ;;  %v520_v42 = vld [vmem:[#allocation8 + $0xd8] sm:$0xff] }
  0x65   :  { %370 = vmatpush1.msra.mxu0 %v143_v24  ;;  %441 = vmatpush1.msra.mxu1 %v145_v25  ;;  %v585_v41 = vld [vmem:[#allocation8 + $0x2e0] sm:$0xff]  ;;  %v584_v43 = vld [vmem:[#allocation8 + $0x2d8] sm:$0xff]  ;;  %v519_v44 = vld [vmem:[#allocation8 + $0xd0] sm:$0xff] }
  0x66   :  { %371 = vmatprep.subr.mxu0 %v136_v26  ;;  %442 = vmatprep.subr.mxu1 %v138_v27  ;;  %v583_v45 = vld [vmem:[#allocation8 + $0x2d0] sm:$0xff]  ;;  %v518_v46 = vld [vmem:[#allocation8 + $0xc8] sm:$0xff]  ;;  %v517_v48 = vld [vmem:[#allocation8 + $0xc0] sm:$0xff] }
  0x67   :  { %372 = vmatpush1.msra.mxu0 %v135_v28  ;;  %407 = vmatprep.mubr.f32.mxu0 %v1612_v0  ;;  %v582_v47 = vld [vmem:[#allocation8 + $0x2c8] sm:$0xff]  ;;  %v581_v49 = vld [vmem:[#allocation8 + $0x2c0] sm:$0xff]  ;;  %v516_v50 = vld [vmem:[#allocation8 + $0xb8] sm:$0xff] }
  0x68   :  { %373 = vmatprep.subr.mxu0 %v128_v29  ;;  %443 = vmatpush1.msra.mxu1 %v137_v30  ;;  %v580_v51 = vld [vmem:[#allocation8 + $0x2b8] sm:$0xff]  ;;  %v515_v52 = vld [vmem:[#allocation8 + $0xb0] sm:$0xff]  ;;  %v514_v54 = vld [vmem:[#allocation8 + $0xa8] sm:$0xff] }
  0x69   :  { %374 = vmatpush1.msra.mxu0 %v127_v31  ;;  %444 = vmatprep.subr.mxu1 %v130_v32  ;;  %v579_v53 = vld [vmem:[#allocation8 + $0x2b0] sm:$0xff]  ;;  %v578_v55 = vld [vmem:[#allocation8 + $0x2a8] sm:$0xff]  ;;  %v513_v56 = vld [vmem:[#allocation8 + $0xa0] sm:$0xff] }
  0x6a   :  { %1311 = vmatmul.mubr.msk.f32.vlgmr.msra.gmra.mxu0 %vm197_vm0, %v122_v17  ;;  %445 = vmatpush1.msra.mxu1 %v129_v33  ;;  %v577_v57 = vld [vmem:[#allocation8 + $0x2a0] sm:$0xff]  ;;  %v512_v58 = vld [vmem:[#allocation8 + $0x98] sm:$0xff]  ;;  %v511_v60 = vld [vmem:[#allocation8 + $0x90] sm:$0xff] }
  0x6b   :  { %478 = vmatprep.mubr.f32.mxu1 %v1612_v0  ;;  %633 = vmatprep.subr.mxu0 %v524_v34  ;;  %v576_v59 = vld [vmem:[#allocation8 + $0x298] sm:$0xff]  ;;  %v575_v61 = vld [vmem:[#allocation8 + $0x290] sm:$0xff]  ;;  %v510_v62 = vld [vmem:[#allocation8 + $0x88] sm:$0xff] }
  0x6c   :  { %1312 = vmatmul.mubr.msk.f32.vlgmr.msra.gmra.mxu1 %vm197_vm0, %v122_v17  ;;  %704 = vmatprep.subr.mxu1 %v588_v35  ;;  %v574_v63 = vld [vmem:[#allocation8 + $0x288] sm:$0xff]  ;;  %v509_v0 = vld [vmem:[#allocation8 + $0x80] sm:$0xff]  ;;  %v508_v2 = vld [vmem:[#allocation8 + $0x78] sm:$0xff] }
  0x6d   :  { %634 = vmatpush1.msra.mxu0 %v523_v36  ;;  %705 = vmatpush1.msra.mxu1 %v587_v37  ;;  %v573_v1 = vld [vmem:[#allocation8 + $0x280] sm:$0xff]  ;;  %v572_v3 = vld [vmem:[#allocation8 + $0x278] sm:$0xff]  ;;  %v507_v4 = vld [vmem:[#allocation8 + $0x70] sm:$0xff] }
  0x6e   :  { %635 = vmatprep.subr.mxu0 %v522_v38  ;;  %706 = vmatprep.subr.mxu1 %v586_v39  ;;  %v571_v5 = vld [vmem:[#allocation8 + $0x270] sm:$0xff]  ;;  %v506_v6 = vld [vmem:[#allocation8 + $0x68] sm:$0xff]  ;;  %v505_v8 = vld [vmem:[#allocation8 + $0x60] sm:$0xff] }
  0x6f   :  { %636 = vmatpush1.msra.mxu0 %v521_v40  ;;  %707 = vmatpush1.msra.mxu1 %v585_v41  ;;  %v570_v7 = vld [vmem:[#allocation8 + $0x268] sm:$0xff]  ;;  %v569_v9 = vld [vmem:[#allocation8 + $0x260] sm:$0xff]  ;;  %v504_v10 = vld [vmem:[#allocation8 + $0x58] sm:$0xff] }
  0x70   :  { %637 = vmatprep.subr.mxu0 %v520_v42  ;;  %708 = vmatprep.subr.mxu1 %v584_v43  ;;  %v568_v11 = vld [vmem:[#allocation8 + $0x258] sm:$0xff]  ;;  %v503_v12 = vld [vmem:[#allocation8 + $0x50] sm:$0xff]  ;;  %v502_v14 = vld [vmem:[#allocation8 + $0x48] sm:$0xff] }
  0x71   :  { %638 = vmatpush1.msra.mxu0 %v519_v44  ;;  %709 = vmatpush1.msra.mxu1 %v583_v45  ;;  %v567_v13 = vld [vmem:[#allocation8 + $0x250] sm:$0xff]  ;;  %v566_v15 = vld [vmem:[#allocation8 + $0x248] sm:$0xff]  ;;  %v501_v16 = vld [vmem:[#allocation8 + $0x40] sm:$0xff] }
  0x72   :  { %639 = vmatprep.subr.mxu0 %v518_v46  ;;  %710 = vmatprep.subr.mxu1 %v582_v47  ;;  %v565_v17 = vld [vmem:[#allocation8 + $0x240] sm:$0xff]  ;;  %v500_v18 = vld [vmem:[#allocation8 + $0x38] sm:$0xff]  ;;  %v499_v20 = vld [vmem:[#allocation8 + $0x30] sm:$0xff] }
  0x73   :  { %640 = vmatpush1.msra.mxu0 %v517_v48  ;;  %711 = vmatpush1.msra.mxu1 %v581_v49  ;;  %v564_v19 = vld [vmem:[#allocation8 + $0x238] sm:$0xff]  ;;  %v563_v21 = vld [vmem:[#allocation8 + $0x230] sm:$0xff]  ;;  %v498_v22 = vld [vmem:[#allocation8 + $0x28] sm:$0xff] }
  0x74   :  { %641 = vmatprep.subr.mxu0 %v516_v50  ;;  %712 = vmatprep.subr.mxu1 %v580_v51  ;;  %v562_v23 = vld [vmem:[#allocation8 + $0x228] sm:$0xff]  ;;  %v497_v24 = vld [vmem:[#allocation8 + $0x20] sm:$0xff]  ;;  %v496_v26 = vld [vmem:[#allocation8 + $0x18] sm:$0xff] }
  0x75   :  { %642 = vmatpush1.msra.mxu0 %v515_v52  ;;  %713 = vmatpush1.msra.mxu1 %v579_v53  ;;  %v561_v25 = vld [vmem:[#allocation8 + $0x220] sm:$0xff]  ;;  %v560_v27 = vld [vmem:[#allocation8 + $0x218] sm:$0xff]  ;;  %v495_v28 = vld [vmem:[#allocation8 + $0x10] sm:$0xff] }
  0x76   :  { %643 = vmatprep.subr.mxu0 %v514_v54  ;;  %714 = vmatprep.subr.mxu1 %v578_v55  ;;  %v559_v29 = vld [vmem:[#allocation8 + $0x210] sm:$0xff]  ;;  %v494_v30 = vld [vmem:[#allocation8 + $0x8] sm:$0xff]  ;;  %v493_v32 = vld [vmem:[#allocation8] sm:$0xff] }
  0x77   :  { %644 = vmatpush1.msra.mxu0 %v513_v56  ;;  %715 = vmatpush1.msra.mxu1 %v577_v57  ;;  %v558_v31 = vld [vmem:[#allocation8 + $0x208] sm:$0xff]  ;;  %v557_v33 = vld [vmem:[#allocation8 + $0x200] sm:$0xff]  ;;  %v556_v34 = vld [vmem:[#allocation8 + $0x1f8] sm:$0xff] }
  0x78   :  { %645 = vmatprep.subr.mxu0 %v512_v58  ;;  %716 = vmatprep.subr.mxu1 %v576_v59  ;;  %v620_v35 = vld [vmem:[#allocation8 + $0x3f8] sm:$0xff]  ;;  %v555_v36 = vld [vmem:[#allocation8 + $0x1f0] sm:$0xff]  ;;  %v554_v38 = vld [vmem:[#allocation8 + $0x1e8] sm:$0xff] }
  0x79   :  { %646 = vmatpush1.msra.mxu0 %v511_v60  ;;  %717 = vmatpush1.msra.mxu1 %v575_v61  ;;  %v619_v37 = vld [vmem:[#allocation8 + $0x3f0] sm:$0xff]  ;;  %v618_v39 = vld [vmem:[#allocation8 + $0x3e8] sm:$0xff]  ;;  %v553_v40 = vld [vmem:[#allocation8 + $0x1e0] sm:$0xff] }
  0x7a   :  { %647 = vmatprep.subr.mxu0 %v510_v62  ;;  %718 = vmatprep.subr.mxu1 %v574_v63  ;;  %v617_v41 = vld [vmem:[#allocation8 + $0x3e0] sm:$0xff]  ;;  %v552_v42 = vld [vmem:[#allocation8 + $0x1d8] sm:$0xff]  ;;  %v551_v44 = vld [vmem:[#allocation8 + $0x1d0] sm:$0xff] }
  0x7b   :  { %648 = vmatpush1.msra.mxu0 %v509_v0  ;;  %719 = vmatpush1.msra.mxu1 %v573_v1  ;;  %v616_v43 = vld [vmem:[#allocation8 + $0x3d8] sm:$0xff]  ;;  %v615_v45 = vld [vmem:[#allocation8 + $0x3d0] sm:$0xff]  ;;  %v550_v46 = vld [vmem:[#allocation8 + $0x1c8] sm:$0xff] }
  0x7c   :  { %649 = vmatprep.subr.mxu0 %v508_v2  ;;  %720 = vmatprep.subr.mxu1 %v572_v3  ;;  %v614_v47 = vld [vmem:[#allocation8 + $0x3c8] sm:$0xff]  ;;  %v549_v48 = vld [vmem:[#allocation8 + $0x1c0] sm:$0xff]  ;;  %v548_v50 = vld [vmem:[#allocation8 + $0x1b8] sm:$0xff] }
  0x7d   :  { %650 = vmatpush1.msra.mxu0 %v507_v4  ;;  %721 = vmatpush1.msra.mxu1 %v571_v5  ;;  %v613_v49 = vld [vmem:[#allocation8 + $0x3c0] sm:$0xff]  ;;  %v612_v51 = vld [vmem:[#allocation8 + $0x3b8] sm:$0xff]  ;;  %v547_v52 = vld [vmem:[#allocation8 + $0x1b0] sm:$0xff] }
  0x7e   :  { %651 = vmatprep.subr.mxu0 %v506_v6  ;;  %722 = vmatprep.subr.mxu1 %v570_v7  ;;  %v611_v53 = vld [vmem:[#allocation8 + $0x3b0] sm:$0xff]  ;;  %v546_v54 = vld [vmem:[#allocation8 + $0x1a8] sm:$0xff]  ;;  %v545_v56 = vld [vmem:[#allocation8 + $0x1a0] sm:$0xff] }
  0x7f   :  { %652 = vmatpush1.msra.mxu0 %v505_v8  ;;  %723 = vmatpush1.msra.mxu1 %v569_v9  ;;  %v610_v55 = vld [vmem:[#allocation8 + $0x3a8] sm:$0xff]  ;;  %v609_v57 = vld [vmem:[#allocation8 + $0x3a0] sm:$0xff]  ;;  %v544_v58 = vld [vmem:[#allocation8 + $0x198] sm:$0xff] }
  0x80   :  { %653 = vmatprep.subr.mxu0 %v504_v10  ;;  %724 = vmatprep.subr.mxu1 %v568_v11  ;;  %v608_v59 = vld [vmem:[#allocation8 + $0x398] sm:$0xff]  ;;  %v543_v60 = vld [vmem:[#allocation8 + $0x190] sm:$0xff]  ;;  %v542_v62 = vld [vmem:[#allocation8 + $0x188] sm:$0xff] }
  0x81   :  { %654 = vmatpush1.msra.mxu0 %v503_v12  ;;  %725 = vmatpush1.msra.mxu1 %v567_v13  ;;  %v607_v61 = vld [vmem:[#allocation8 + $0x390] sm:$0xff]  ;;  %v606_v63 = vld [vmem:[#allocation8 + $0x388] sm:$0xff]  ;;  %v541_v0 = vld [vmem:[#allocation8 + $0x180] sm:$0xff] }
  0x82   :  { %655 = vmatprep.subr.mxu0 %v502_v14  ;;  %726 = vmatprep.subr.mxu1 %v566_v15  ;;  %v605_v1 = vld [vmem:[#allocation8 + $0x380] sm:$0xff]  ;;  %v540_v2 = vld [vmem:[#allocation8 + $0x178] sm:$0xff]  ;;  %v539_v4 = vld [vmem:[#allocation8 + $0x170] sm:$0xff] }
  0x83   :  { %656 = vmatpush1.msra.mxu0 %v501_v16  ;;  %727 = vmatpush1.msra.mxu1 %v565_v17  ;;  %v604_v3 = vld [vmem:[#allocation8 + $0x378] sm:$0xff]  ;;  %v603_v5 = vld [vmem:[#allocation8 + $0x370] sm:$0xff]  ;;  %v538_v6 = vld [vmem:[#allocation8 + $0x168] sm:$0xff] }
  0x84   :  { %657 = vmatprep.subr.mxu0 %v500_v18  ;;  %728 = vmatprep.subr.mxu1 %v564_v19  ;;  %v602_v7 = vld [vmem:[#allocation8 + $0x368] sm:$0xff]  ;;  %v537_v8 = vld [vmem:[#allocation8 + $0x160] sm:$0xff]  ;;  %v536_v10 = vld [vmem:[#allocation8 + $0x158] sm:$0xff] }
  0x85   :  { %658 = vmatpush1.msra.mxu0 %v499_v20  ;;  %729 = vmatpush1.msra.mxu1 %v563_v21  ;;  %v601_v9 = vld [vmem:[#allocation8 + $0x360] sm:$0xff]  ;;  %v600_v11 = vld [vmem:[#allocation8 + $0x358] sm:$0xff]  ;;  %v535_v12 = vld [vmem:[#allocation8 + $0x150] sm:$0xff] }
  0x86   :  { %659 = vmatprep.subr.mxu0 %v498_v22  ;;  %730 = vmatprep.subr.mxu1 %v562_v23  ;;  %v599_v13 = vld [vmem:[#allocation8 + $0x350] sm:$0xff]  ;;  %v534_v14 = vld [vmem:[#allocation8 + $0x148] sm:$0xff]  ;;  %v533_v16 = vld [vmem:[#allocation8 + $0x140] sm:$0xff] }
  0x87   :  { %660 = vmatpush1.msra.mxu0 %v497_v24  ;;  %731 = vmatpush1.msra.mxu1 %v561_v25  ;;  %v598_v15 = vld [vmem:[#allocation8 + $0x348] sm:$0xff]  ;;  %v597_v17 = vld [vmem:[#allocation8 + $0x340] sm:$0xff]  ;;  %v532_v18 = vld [vmem:[#allocation8 + $0x138] sm:$0xff] }
  0x88   :  { %661 = vmatprep.subr.mxu0 %v496_v26  ;;  %732 = vmatprep.subr.mxu1 %v560_v27  ;;  %v596_v19 = vld [vmem:[#allocation8 + $0x338] sm:$0xff]  ;;  %v531_v20 = vld [vmem:[#allocation8 + $0x130] sm:$0xff]  ;;  %v530_v22 = vld [vmem:[#allocation8 + $0x128] sm:$0xff] }
  0x89   :  { %662 = vmatpush1.msra.mxu0 %v495_v28  ;;  %733 = vmatpush1.msra.mxu1 %v559_v29  ;;  %v595_v21 = vld [vmem:[#allocation8 + $0x330] sm:$0xff]  ;;  %v594_v23 = vld [vmem:[#allocation8 + $0x328] sm:$0xff]  ;;  %v529_v24 = vld [vmem:[#allocation8 + $0x120] sm:$0xff] }
  0x8a   :  { %663 = vmatprep.subr.mxu0 %v494_v30  ;;  %734 = vmatprep.subr.mxu1 %v558_v31  ;;  %v593_v25 = vld [vmem:[#allocation8 + $0x320] sm:$0xff]  ;;  %v528_v26 = vld [vmem:[#allocation8 + $0x118] sm:$0xff]  ;;  %v527_v28 = vld [vmem:[#allocation8 + $0x110] sm:$0xff] }
  0x8b   :  { %664 = vmatpush1.msra.mxu0 %v493_v32  ;;  %735 = vmatpush1.msra.mxu1 %v557_v33  ;;  %v592_v27 = vld [vmem:[#allocation8 + $0x318] sm:$0xff]  ;;  %v591_v29 = vld [vmem:[#allocation8 + $0x310] sm:$0xff]  ;;  %v526_v30 = vld [vmem:[#allocation8 + $0x108] sm:$0xff] }
  0x8c   :  { %665 = vmatprep.subr.mxu0 %v556_v34  ;;  %736 = vmatprep.subr.mxu1 %v620_v35  ;;  %v590_v31 = vld [vmem:[#allocation8 + $0x308] sm:$0xff]  ;;  %v525_v32 = vld [vmem:[#allocation8 + $0x100] sm:$0xff] }
  0x8d   :  { %666 = vmatpush2.msra.mxu0 %v555_v36  ;;  %737 = vmatpush2.msra.mxu1 %v619_v37  ;;  %v589_v33 = vld [vmem:[#allocation8 + $0x300] sm:$0xff]  ;;  %v157_v36 = vlaneseq }
  0x8e   :  { %667 = vmatprep.subr.mxu0 %v554_v38  ;;  %738 = vmatprep.subr.mxu1 %v618_v39  ;;  %v808_v34 = vld [vmem:[#allocation11 + $0xf8] sm:$0xff] }
  0x8f   :  { %668 = vmatpush2.msra.mxu0 %v553_v40  ;;  %739 = vmatpush2.msra.mxu1 %v617_v41  ;;  %v872_v35 = vld [vmem:[#allocation11 + $0x2f8] sm:$0xff]  ;;  %v1694_v37 = vshrl.u32 %v157_v36, 7 }
  0x90   :  { %669 = vmatprep.subr.mxu0 %v552_v42  ;;  %740 = vmatprep.subr.mxu1 %v616_v43  ;;  %v1700_v40 = vld [vmem:[#allocation7] sm:$0xff] }
  0x91   :  { %670 = vmatpush2.msra.mxu0 %v551_v44  ;;  %741 = vmatpush2.msra.mxu1 %v615_v45  ;;  %v1697_v38 = vsub.s32 0, %v1694_v37  ;;  %v167_v39 = vsub.s32 2, %v1694_v37  ;;  %v1703_v41 = vsub.s32 1, %v1694_v37  ;;  %v171_v42 = vsub.s32 3, %v1694_v37 }
  0x92   :  { %671 = vmatprep.subr.mxu0 %v550_v46  ;;  %742 = vmatprep.subr.mxu1 %v614_v47 }
  0x93   :  { %672 = vmatpush2.msra.mxu0 %v549_v48  ;;  %743 = vmatpush2.msra.mxu1 %v613_v49  ;;  %v160_v43 = vrot.slane %v1700_v40, %v1697_v38  ;;  %v168_v44 = vrot.slane %v1700_v40, %v167_v39  ;;  %v164_v45 = vrot.slane %v1700_v40, %v1703_v41  ;;  %v851_v39 = vld [vmem:[#allocation11 + $0x250] sm:$0xff] }
  0x94   :  { %673 = vmatprep.subr.mxu0 %v548_v50  ;;  %744 = vmatprep.subr.mxu1 %v612_v51  ;;  %v172_v46 = vrot.slane %v1700_v40, %v171_v42  ;;  %v786_v42 = vld [vmem:[#allocation11 + $0x48] sm:$0xff] }
  0x95   :  { %674 = vmatpush2.msra.mxu0 %v547_v52  ;;  %745 = vmatpush2.msra.mxu1 %v611_v53 }
  0x96   :  { %675 = vmatprep.subr.mxu0 %v546_v54  ;;  %746 = vmatprep.subr.mxu1 %v610_v55 }
  0x97   :  { %676 = vmatpush2.msra.mxu0 %v545_v56  ;;  %747 = vmatpush2.msra.mxu1 %v609_v57 }
  0x98   :  { %677 = vmatprep.subr.mxu0 %v544_v58  ;;  %748 = vmatprep.subr.mxu1 %v608_v59  ;;  %v807_v58 = vld [vmem:[#allocation11 + $0xf0] sm:$0xff] }
  0x99   :  { %678 = vmatpush2.msra.mxu0 %v543_v60  ;;  %749 = vmatpush2.msra.mxu1 %v607_v61  ;;  %v871_v60 = vld [vmem:[#allocation11 + $0x2f0] sm:$0xff]  ;;  %v806_v61 = vld [vmem:[#allocation11 + $0xe8] sm:$0xff] }
  0x9a   :  { %679 = vmatprep.subr.mxu0 %v542_v62  ;;  %750 = vmatprep.subr.mxu1 %v606_v63  ;;  %v870_v62 = vld [vmem:[#allocation11 + $0x2e8] sm:$0xff]  ;;  %v805_v63 = vld [vmem:[#allocation11 + $0xe0] sm:$0xff] }
  0x9b   :  { %680 = vmatpush2.msra.mxu0 %v541_v0  ;;  %751 = vmatpush2.msra.mxu1 %v605_v1  ;;  %v869_v0 = vld [vmem:[#allocation11 + $0x2e0] sm:$0xff]  ;;  %v804_v1 = vld [vmem:[#allocation11 + $0xd8] sm:$0xff] }
  0x9c   :  { %681 = vmatprep.subr.mxu0 %v540_v2  ;;  %752 = vmatprep.subr.mxu1 %v604_v3  ;;  %v868_v2 = vld [vmem:[#allocation11 + $0x2d8] sm:$0xff]  ;;  %v803_v3 = vld [vmem:[#allocation11 + $0xd0] sm:$0xff] }
  0x9d   :  { %682 = vmatpush2.msra.mxu0 %v539_v4  ;;  %753 = vmatpush2.msra.mxu1 %v603_v5  ;;  %v867_v4 = vld [vmem:[#allocation11 + $0x2d0] sm:$0xff]  ;;  %v802_v5 = vld [vmem:[#allocation11 + $0xc8] sm:$0xff] }
  0x9e   :  { %683 = vmatprep.subr.mxu0 %v538_v6  ;;  %754 = vmatprep.subr.mxu1 %v602_v7  ;;  %v866_v6 = vld [vmem:[#allocation11 + $0x2c8] sm:$0xff]  ;;  %v801_v7 = vld [vmem:[#allocation11 + $0xc0] sm:$0xff] }
  0x9f   :  { %684 = vmatpush2.msra.mxu0 %v537_v8  ;;  %755 = vmatpush2.msra.mxu1 %v601_v9  ;;  %v865_v8 = vld [vmem:[#allocation11 + $0x2c0] sm:$0xff]  ;;  %v800_v9 = vld [vmem:[#allocation11 + $0xb8] sm:$0xff] }
  0xa0   :  { %685 = vmatprep.subr.mxu0 %v536_v10  ;;  %756 = vmatprep.subr.mxu1 %v600_v11  ;;  %v864_v10 = vld [vmem:[#allocation11 + $0x2b8] sm:$0xff]  ;;  %v799_v11 = vld [vmem:[#allocation11 + $0xb0] sm:$0xff] }
  0xa1   :  { %686 = vmatpush2.msra.mxu0 %v535_v12  ;;  %757 = vmatpush2.msra.mxu1 %v599_v13  ;;  %v863_v12 = vld [vmem:[#allocation11 + $0x2b0] sm:$0xff]  ;;  %v798_v13 = vld [vmem:[#allocation11 + $0xa8] sm:$0xff] }
  0xa2   :  { %687 = vmatprep.subr.mxu0 %v534_v14  ;;  %758 = vmatprep.subr.mxu1 %v598_v15  ;;  %v862_v14 = vld [vmem:[#allocation11 + $0x2a8] sm:$0xff]  ;;  %v797_v15 = vld [vmem:[#allocation11 + $0xa0] sm:$0xff] }
  0xa3   :  { %688 = vmatpush2.msra.mxu0 %v533_v16  ;;  %759 = vmatpush2.msra.mxu1 %v597_v17  ;;  %v861_v16 = vld [vmem:[#allocation11 + $0x2a0] sm:$0xff]  ;;  %v796_v17 = vld [vmem:[#allocation11 + $0x98] sm:$0xff] }
  0xa4   :  { %689 = vmatprep.subr.mxu0 %v532_v18  ;;  %760 = vmatprep.subr.mxu1 %v596_v19  ;;  %v860_v18 = vld [vmem:[#allocation11 + $0x298] sm:$0xff]  ;;  %v795_v19 = vld [vmem:[#allocation11 + $0x90] sm:$0xff] }
  0xa5   :  { %690 = vmatpush2.msra.mxu0 %v531_v20  ;;  %761 = vmatpush2.msra.mxu1 %v595_v21  ;;  %v859_v20 = vld [vmem:[#allocation11 + $0x290] sm:$0xff]  ;;  %v794_v21 = vld [vmem:[#allocation11 + $0x88] sm:$0xff] }
  0xa6   :  { %691 = vmatprep.subr.mxu0 %v530_v22  ;;  %762 = vmatprep.subr.mxu1 %v594_v23  ;;  %v858_v22 = vld [vmem:[#allocation11 + $0x288] sm:$0xff]  ;;  %v793_v23 = vld [vmem:[#allocation11 + $0x80] sm:$0xff] }
  0xa7   :  { %692 = vmatpush2.msra.mxu0 %v529_v24  ;;  %763 = vmatpush2.msra.mxu1 %v593_v25  ;;  %v857_v24 = vld [vmem:[#allocation11 + $0x280] sm:$0xff]  ;;  %v792_v25 = vld [vmem:[#allocation11 + $0x78] sm:$0xff] }
  0xa8   :  { %693 = vmatprep.subr.mxu0 %v528_v26  ;;  %764 = vmatprep.subr.mxu1 %v592_v27  ;;  %v856_v26 = vld [vmem:[#allocation11 + $0x278] sm:$0xff]  ;;  %v791_v27 = vld [vmem:[#allocation11 + $0x70] sm:$0xff] }
  0xa9   :  { %694 = vmatpush2.msra.mxu0 %v527_v28  ;;  %765 = vmatpush2.msra.mxu1 %v591_v29  ;;  %v855_v28 = vld [vmem:[#allocation11 + $0x270] sm:$0xff]  ;;  %v790_v29 = vld [vmem:[#allocation11 + $0x68] sm:$0xff] }
  0xaa   :  { %695 = vmatprep.subr.mxu0 %v526_v30  ;;  %766 = vmatprep.subr.mxu1 %v590_v31  ;;  %v854_v30 = vld [vmem:[#allocation11 + $0x268] sm:$0xff]  ;;  %v789_v31 = vld [vmem:[#allocation11 + $0x60] sm:$0xff] }
  0xab   :  { %696 = vmatpush2.msra.mxu0 %v525_v32  ;;  %767 = vmatpush2.msra.mxu1 %v589_v33  ;;  %v853_v32 = vld [vmem:[#allocation11 + $0x260] sm:$0xff]  ;;  %v788_v33 = vld [vmem:[#allocation11 + $0x58] sm:$0xff] }
  0xac   :  { %917 = vmatprep.subr.mxu0 %v808_v34  ;;  %988 = vmatprep.subr.mxu1 %v872_v35  ;;  %v852_v34 = vld [vmem:[#allocation11 + $0x258] sm:$0xff]  ;;  %v787_v35 = vld [vmem:[#allocation11 + $0x50] sm:$0xff] }
 0x121   :  { %v267_v47 = vpop.f32.mrf.mxu0  ;;  %v338_v48 = vpop.f32.mrf.mxu1 }
 0x122   :  { %v268_v49 = vadd.f32 %v267_v47, %v160_v43  ;;  %v339_v50 = vadd.f32 %v338_v48, %v168_v44  ;;  %v850_v43 = vld [vmem:[#allocation11 + $0x248] sm:$0xff]  ;;  %v785_v44 = vld [vmem:[#allocation11 + $0x40] sm:$0xff]  ;;  %v848_v47 = vld [vmem:[#allocation11 + $0x238] sm:$0xff] }
 0x123   :  { %v269_v51 = vpop.f32.mrf.mxu0  ;;  %v340_v52 = vpop.f32.mrf.mxu1  ;;  %v783_v48 = vld [vmem:[#allocation11 + $0x30] sm:$0xff] }
 0x124   :  { %1399 = vtanh.f32 %v268_v49  ;;  %v270_v53 = vadd.f32 %v269_v51, %v164_v45  ;;  %v341_v54 = vadd.f32 %v340_v52, %v172_v46  ;;  %v849_v45 = vld [vmem:[#allocation11 + $0x240] sm:$0xff]  ;;  %v784_v46 = vld [vmem:[#allocation11 + $0x38] sm:$0xff]  ;;  %v847_v49 = vld [vmem:[#allocation11 + $0x230] sm:$0xff] }
 0x125   :  { %1401 = vtanh.f32 %v339_v50  ;;  %v782_v50 = vld [vmem:[#allocation11 + $0x28] sm:$0xff]  ;;  %v781_v52 = vld [vmem:[#allocation11 + $0x20] sm:$0xff] }
 0x126   :  { %1403 = vtanh.f32 %v270_v53  ;;  %v846_v51 = vld [vmem:[#allocation11 + $0x228] sm:$0xff]  ;;  %v845_v53 = vld [vmem:[#allocation11 + $0x220] sm:$0xff] }
 0x127   :  { %1405 = vtanh.f32 %v341_v54  ;;  %v780_v54 = vld [vmem:[#allocation11 + $0x18] sm:$0xff] }
 0x131   :  { %v1400_v55 = vpop.eup %1399 }
 0x132   :  { %v1402_v56 = vpop.eup %1401 }
 0x133   :  { %v1404_v57 = vpop.eup %1403 }
 0x134   :  { %v1406_v59 = vpop.eup %1405  ;;  %697 = vmatprep.mubr.f32.mxu0 %v1404_v57  ;;  %v843_v57 = vld [vmem:[#allocation11 + $0x210] sm:$0xff] }
 0x135   :  { %768 = vmatprep.mubr.f32.mxu1 %v1406_v59  ;;  %698 = vmatmul.mubr.f32.vlgmr.msra.gmra.mxu0 %v1400_v55  ;;  %v844_v55 = vld [vmem:[#allocation11 + $0x218] sm:$0xff]  ;;  %v842_v59 = vld [vmem:[#allocation11 + $0x208] sm:$0xff] }
 0x136   :  { %769 = vmatmul.mubr.f32.vlgmr.msra.gmra.mxu1 %v1402_v56  ;;  %918 = vmatpush1.msra.mxu0 %v807_v58  ;;  %v779_v56 = vld [vmem:[#allocation11 + $0x10] sm:$0xff]  ;;  %v778_v58 = vld [vmem:[#allocation11 + $0x8] sm:$0xff] }
 0x137   :  { %989 = vmatpush1.msra.mxu1 %v871_v60  ;;  %919 = vmatprep.subr.mxu0 %v806_v61  ;;  %v777_v60 = vld [vmem:[#allocation11] sm:$0xff] }
 0x138   :  { %990 = vmatprep.subr.mxu1 %v870_v62  ;;  %920 = vmatpush1.msra.mxu0 %v805_v63  ;;  %v841_v61 = vld [vmem:[#allocation11 + $0x200] sm:$0xff]  ;;  %v840_v62 = vld [vmem:[#allocation11 + $0x1f8] sm:$0xff] }
 0x139   :  { %991 = vmatpush1.msra.mxu1 %v869_v0  ;;  %921 = vmatprep.subr.mxu0 %v804_v1  ;;  %v904_v63 = vld [vmem:[#allocation11 + $0x3f8] sm:$0xff]  ;;  %v839_v0 = vld [vmem:[#allocation11 + $0x1f0] sm:$0xff] }
 0x13a   :  { %992 = vmatprep.subr.mxu1 %v868_v2  ;;  %922 = vmatpush1.msra.mxu0 %v803_v3  ;;  %v903_v1 = vld [vmem:[#allocation11 + $0x3f0] sm:$0xff]  ;;  %v838_v2 = vld [vmem:[#allocation11 + $0x1e8] sm:$0xff] }
 0x13b   :  { %993 = vmatpush1.msra.mxu1 %v867_v4  ;;  %923 = vmatprep.subr.mxu0 %v802_v5  ;;  %v902_v3 = vld [vmem:[#allocation11 + $0x3e8] sm:$0xff]  ;;  %v837_v4 = vld [vmem:[#allocation11 + $0x1e0] sm:$0xff] }
 0x13c   :  { %994 = vmatprep.subr.mxu1 %v866_v6  ;;  %924 = vmatpush1.msra.mxu0 %v801_v7  ;;  %v901_v5 = vld [vmem:[#allocation11 + $0x3e0] sm:$0xff]  ;;  %v836_v6 = vld [vmem:[#allocation11 + $0x1d8] sm:$0xff] }
 0x13d   :  { %995 = vmatpush1.msra.mxu1 %v865_v8  ;;  %925 = vmatprep.subr.mxu0 %v800_v9  ;;  %v900_v7 = vld [vmem:[#allocation11 + $0x3d8] sm:$0xff]  ;;  %v835_v8 = vld [vmem:[#allocation11 + $0x1d0] sm:$0xff]  ;;  %v179_v9 = vsub.s32 5, %v1694_v37 }
 0x13e   :  { %996 = vmatprep.subr.mxu1 %v864_v10  ;;  %926 = vmatpush1.msra.mxu0 %v799_v11  ;;  %v899_v10 = vld [vmem:[#allocation11 + $0x3d0] sm:$0xff]  ;;  %v834_v11 = vld [vmem:[#allocation11 + $0x1c8] sm:$0xff] }
 0x13f   :  { %997 = vmatpush1.msra.mxu1 %v863_v12  ;;  %927 = vmatprep.subr.mxu0 %v798_v13  ;;  %v409_v12 = vpop.f32.mrf.mxu0  ;;  %v898_v13 = vld [vmem:[#allocation11 + $0x3c8] sm:$0xff] }
 0x140   :  { %998 = vmatprep.subr.mxu1 %v862_v14  ;;  %928 = vmatpush1.msra.mxu0 %v797_v15  ;;  %v833_v14 = vld [vmem:[#allocation11 + $0x1c0] sm:$0xff] }
 0x141   :  { %999 = vmatpush1.msra.mxu1 %v861_v16  ;;  %929 = vmatprep.subr.mxu0 %v796_v17  ;;  %v897_v15 = vld [vmem:[#allocation11 + $0x3c0] sm:$0xff]  ;;  %v832_v16 = vld [vmem:[#allocation11 + $0x1b8] sm:$0xff]  ;;  %v187_v17 = vsub.s32 7, %v1694_v37 }
 0x142   :  { %1000 = vmatprep.subr.mxu1 %v860_v18  ;;  %930 = vmatpush1.msra.mxu0 %v795_v19  ;;  %v896_v18 = vld [vmem:[#allocation11 + $0x3b8] sm:$0xff]  ;;  %v831_v19 = vld [vmem:[#allocation11 + $0x1b0] sm:$0xff] }
 0x143   :  { %1001 = vmatpush1.msra.mxu1 %v859_v20  ;;  %931 = vmatprep.subr.mxu0 %v794_v21  ;;  %v180_v20 = vrot.slane %v1700_v40, %v179_v9  ;;  %v183_v21 = vsub.s32 6, %v1694_v37  ;;  %v812_v9 = vld [vmem:[#allocation11 + $0x118] sm:$0xff] }
 0x144   :  { %1002 = vmatprep.subr.mxu1 %v858_v22  ;;  %932 = vmatpush1.msra.mxu0 %v793_v23  ;;  %v480_v22 = vpop.f32.mrf.mxu1  ;;  %v895_v23 = vld [vmem:[#allocation11 + $0x3b0] sm:$0xff] }
 0x145   :  { %1003 = vmatpush1.msra.mxu1 %v857_v24  ;;  %933 = vmatprep.subr.mxu0 %v792_v25  ;;  %v175_v24 = vsub.s32 4, %v1694_v37  ;;  %v830_v25 = vld [vmem:[#allocation11 + $0x1a8] sm:$0xff] }
 0x146   :  { %1004 = vmatprep.subr.mxu1 %v856_v26  ;;  %934 = vmatpush1.msra.mxu0 %v791_v27  ;;  %v411_v26 = vpop.f32.mrf.mxu0  ;;  %v894_v27 = vld [vmem:[#allocation11 + $0x3a8] sm:$0xff]  ;;  %v482_v37 = vpop.f32.mrf.mxu1 }
 0x147   :  { %1005 = vmatpush1.msra.mxu1 %v855_v28  ;;  %935 = vmatprep.subr.mxu0 %v790_v29  ;;  %v829_v28 = vld [vmem:[#allocation11 + $0x1a0] sm:$0xff] }
 0x148   :  { %1006 = vmatprep.subr.mxu1 %v854_v30  ;;  %936 = vmatpush1.msra.mxu0 %v789_v31  ;;  %v893_v29 = vld [vmem:[#allocation11 + $0x3a0] sm:$0xff]  ;;  %v828_v30 = vld [vmem:[#allocation11 + $0x198] sm:$0xff]  ;;  %v188_v31 = vrot.slane %v1700_v40, %v187_v17 }
 0x149   :  { %1007 = vmatpush1.msra.mxu1 %v853_v32  ;;  %937 = vmatprep.subr.mxu0 %v788_v33  ;;  %v412_v32 = vadd.f32 %v411_v26, %v180_v20  ;;  %v184_v33 = vrot.slane %v1700_v40, %v183_v21  ;;  %v873_v17 = vld [vmem:[#allocation11 + $0x300] sm:$0xff]  ;;  %v1092_v20 = vld [vmem:[#allocation13 + $0xf8] sm:$0xff]  ;;  %v1074_v26 = vld [vmem:[#allocation13 + $0x68] sm:$0xff] }
 0x14a   :  { %1008 = vmatprep.subr.mxu1 %v852_v34  ;;  %938 = vmatpush1.msra.mxu0 %v787_v35  ;;  %v892_v34 = vld [vmem:[#allocation11 + $0x398] sm:$0xff]  ;;  %v827_v35 = vld [vmem:[#allocation11 + $0x190] sm:$0xff] }
 0x14b   :  { %1009 = vmatpush1.msra.mxu1 %v851_v39  ;;  %939 = vmatprep.subr.mxu0 %v786_v42  ;;  %v176_v39 = vrot.slane %v1700_v40, %v175_v24  ;;  %v891_v42 = vld [vmem:[#allocation11 + $0x390] sm:$0xff]  ;;  %1407 = vtanh.f32 %v412_v32 }
 0x14c   :  { %1010 = vmatprep.subr.mxu1 %v850_v43  ;;  %940 = vmatpush1.msra.mxu0 %v785_v44  ;;  %v826_v43 = vld [vmem:[#allocation11 + $0x188] sm:$0xff]  ;;  %v1075_v24 = vld [vmem:[#allocation13 + $0x70] sm:$0xff] }
 0x14d   :  { %1011 = vmatpush1.msra.mxu1 %v849_v45  ;;  %941 = vmatprep.subr.mxu0 %v784_v46  ;;  %v890_v44 = vld [vmem:[#allocation11 + $0x388] sm:$0xff]  ;;  %v825_v45 = vld [vmem:[#allocation11 + $0x180] sm:$0xff]  ;;  %v483_v46 = vadd.f32 %v482_v37, %v188_v31  ;;  %v410_v40 = vadd.f32 %v409_v12, %v176_v39  ;;  %v1087_v31 = vld [vmem:[#allocation13 + $0xd0] sm:$0xff] }
 0x14e   :  { %1012 = vmatprep.subr.mxu1 %v848_v47  ;;  %942 = vmatpush1.msra.mxu0 %v783_v48  ;;  %v889_v47 = vld [vmem:[#allocation11 + $0x380] sm:$0xff]  ;;  %v824_v48 = vld [vmem:[#allocation11 + $0x178] sm:$0xff]  ;;  %v1071_v32 = vld [vmem:[#allocation13 + $0x50] sm:$0xff] }
 0x14f   :  { %1013 = vmatpush1.msra.mxu1 %v847_v49  ;;  %943 = vmatprep.subr.mxu0 %v782_v50  ;;  %v481_v49 = vadd.f32 %v480_v22, %v184_v33  ;;  %v888_v50 = vld [vmem:[#allocation11 + $0x378] sm:$0xff]  ;;  %1409 = vtanh.f32 %v483_v46  ;;  %v1086_v33 = vld [vmem:[#allocation13 + $0xc8] sm:$0xff]  ;;  %v1069_v37 = vld [vmem:[#allocation13 + $0x40] sm:$0xff] }
 0x150   :  { %1014 = vmatprep.subr.mxu1 %v846_v51  ;;  %944 = vmatpush1.msra.mxu0 %v781_v52  ;;  %v823_v51 = vld [vmem:[#allocation11 + $0x170] sm:$0xff]  ;;  %v1076_v22 = vld [vmem:[#allocation13 + $0x78] sm:$0xff]  ;;  %v1066_v46 = vld [vmem:[#allocation13 + $0x28] sm:$0xff] }
 0x151   :  { %1015 = vmatpush1.msra.mxu1 %v845_v53  ;;  %945 = vmatprep.subr.mxu0 %v780_v54  ;;  %v887_v52 = vld [vmem:[#allocation11 + $0x370] sm:$0xff]  ;;  %v822_v53 = vld [vmem:[#allocation11 + $0x168] sm:$0xff]  ;;  %1411 = vtanh.f32 %v481_v49  ;;  %v1084_v39 = vld [vmem:[#allocation13 + $0xb8] sm:$0xff] }
 0x152   :  { %1016 = vmatprep.subr.mxu1 %v844_v55  ;;  %946 = vmatpush1.msra.mxu0 %v779_v56  ;;  %v886_v54 = vld [vmem:[#allocation11 + $0x368] sm:$0xff]  ;;  %v821_v55 = vld [vmem:[#allocation11 + $0x160] sm:$0xff]  ;;  %1413 = vtanh.f32 %v410_v40  ;;  %v1124_v49 = vld [vmem:[#allocation13 + $0x1f8] sm:$0xff] }
 0x153   :  { %1017 = vmatpush1.msra.mxu1 %v843_v57  ;;  %947 = vmatprep.subr.mxu0 %v778_v58  ;;  %v885_v56 = vld [vmem:[#allocation11 + $0x360] sm:$0xff]  ;;  %v820_v57 = vld [vmem:[#allocation11 + $0x158] sm:$0xff] }
 0x154   :  { %1018 = vmatprep.subr.mxu1 %v842_v59  ;;  %948 = vmatpush1.msra.mxu0 %v777_v60  ;;  %v884_v58 = vld [vmem:[#allocation11 + $0x358] sm:$0xff]  ;;  %v819_v59 = vld [vmem:[#allocation11 + $0x150] sm:$0xff] }
 0x155   :  { %1019 = vmatpush1.msra.mxu1 %v841_v61  ;;  %949 = vmatprep.subr.mxu0 %v840_v62  ;;  %v883_v60 = vld [vmem:[#allocation11 + $0x350] sm:$0xff]  ;;  %v818_v61 = vld [vmem:[#allocation11 + $0x148] sm:$0xff]  ;;  %v1080_v40 = vld [vmem:[#allocation13 + $0x98] sm:$0xff] }
 0x156   :  { %1020 = vmatprep.subr.mxu1 %v904_v63  ;;  %950 = vmatpush2.msra.mxu0 %v839_v0  ;;  %v882_v62 = vld [vmem:[#allocation11 + $0x348] sm:$0xff]  ;;  %v817_v63 = vld [vmem:[#allocation11 + $0x140] sm:$0xff] }
 0x157   :  { %1021 = vmatpush2.msra.mxu1 %v903_v1  ;;  %951 = vmatprep.subr.mxu0 %v838_v2  ;;  %v881_v0 = vld [vmem:[#allocation11 + $0x340] sm:$0xff]  ;;  %v816_v1 = vld [vmem:[#allocation11 + $0x138] sm:$0xff] }
 0x158   :  { %1022 = vmatprep.subr.mxu1 %v902_v3  ;;  %952 = vmatpush2.msra.mxu0 %v837_v4  ;;  %v880_v2 = vld [vmem:[#allocation11 + $0x338] sm:$0xff]  ;;  %v815_v3 = vld [vmem:[#allocation11 + $0x130] sm:$0xff]  ;;  %v1408_v12 = vpop.eup %1407 }
 0x159   :  { %1023 = vmatpush2.msra.mxu1 %v901_v5  ;;  %953 = vmatprep.subr.mxu0 %v836_v6  ;;  %v879_v4 = vld [vmem:[#allocation11 + $0x330] sm:$0xff]  ;;  %v814_v5 = vld [vmem:[#allocation11 + $0x128] sm:$0xff] }
 0x15a   :  { %1024 = vmatprep.subr.mxu1 %v900_v7  ;;  %954 = vmatpush2.msra.mxu0 %v835_v8  ;;  %v878_v6 = vld [vmem:[#allocation11 + $0x328] sm:$0xff]  ;;  %v813_v7 = vld [vmem:[#allocation11 + $0x120] sm:$0xff] }
 0x15b   :  { %1025 = vmatpush2.msra.mxu1 %v899_v10  ;;  %955 = vmatprep.subr.mxu0 %v834_v11  ;;  %v877_v8 = vld [vmem:[#allocation11 + $0x320] sm:$0xff]  ;;  %v876_v10 = vld [vmem:[#allocation11 + $0x318] sm:$0xff]  ;;  %v811_v11 = vld [vmem:[#allocation11 + $0x110] sm:$0xff] }
 0x15c   :  { %1026 = vmatprep.subr.mxu1 %v898_v13  ;;  %956 = vmatpush2.msra.mxu0 %v833_v14  ;;  %v875_v13 = vld [vmem:[#allocation11 + $0x310] sm:$0xff]  ;;  %v810_v14 = vld [vmem:[#allocation11 + $0x108] sm:$0xff] }
 0x15d   :  { %1027 = vmatpush2.msra.mxu1 %v897_v15  ;;  %957 = vmatprep.subr.mxu0 %v832_v16  ;;  %v874_v15 = vld [vmem:[#allocation11 + $0x308] sm:$0xff]  ;;  %v809_v16 = vld [vmem:[#allocation11 + $0x100] sm:$0xff] }
 0x15e   :  { %1028 = vmatprep.subr.mxu1 %v896_v18  ;;  %958 = vmatpush2.msra.mxu0 %v831_v19  ;;  %v1410_v18 = vpop.eup %1409 }
 0x15f   :  { %1029 = vmatpush2.msra.mxu1 %v895_v23  ;;  %959 = vmatprep.subr.mxu0 %v830_v25  ;;  %v1412_v19 = vpop.eup %1411  ;;  %v1091_v23 = vld [vmem:[#allocation13 + $0xf0] sm:$0xff]  ;;  %v1090_v25 = vld [vmem:[#allocation13 + $0xe8] sm:$0xff] }
 0x160   :  { %1030 = vmatprep.subr.mxu1 %v894_v27  ;;  %960 = vmatpush2.msra.mxu0 %v829_v28  ;;  %v1414_v21 = vpop.eup %1413  ;;  %v1089_v27 = vld [vmem:[#allocation13 + $0xe0] sm:$0xff] }
 0x161   :  { %1031 = vmatpush2.msra.mxu1 %v893_v29  ;;  %961 = vmatprep.subr.mxu0 %v828_v30  ;;  %v1073_v28 = vld [vmem:[#allocation13 + $0x60] sm:$0xff]  ;;  %v1088_v29 = vld [vmem:[#allocation13 + $0xd8] sm:$0xff] }
 0x162   :  { %1032 = vmatprep.subr.mxu1 %v892_v34  ;;  %962 = vmatpush2.msra.mxu0 %v827_v35  ;;  %v1072_v30 = vld [vmem:[#allocation13 + $0x58] sm:$0xff]  ;;  %v1070_v34 = vld [vmem:[#allocation13 + $0x48] sm:$0xff]  ;;  %v1085_v35 = vld [vmem:[#allocation13 + $0xc0] sm:$0xff] }
 0x163   :  { %1033 = vmatpush2.msra.mxu1 %v891_v42  ;;  %963 = vmatprep.subr.mxu0 %v826_v43  ;;  %v1068_v42 = vld [vmem:[#allocation13 + $0x38] sm:$0xff]  ;;  %v1083_v43 = vld [vmem:[#allocation13 + $0xb0] sm:$0xff] }
 0x164   :  { %1034 = vmatprep.subr.mxu1 %v890_v44  ;;  %964 = vmatpush2.msra.mxu0 %v825_v45  ;;  %v1067_v44 = vld [vmem:[#allocation13 + $0x30] sm:$0xff]  ;;  %v1082_v45 = vld [vmem:[#allocation13 + $0xa8] sm:$0xff] }
 0x165   :  { %1035 = vmatpush2.msra.mxu1 %v889_v47  ;;  %965 = vmatprep.subr.mxu0 %v824_v48  ;;  %v1081_v47 = vld [vmem:[#allocation13 + $0xa0] sm:$0xff] }
 0x166   :  { %1036 = vmatprep.subr.mxu1 %v888_v50  ;;  %966 = vmatpush2.msra.mxu0 %v823_v51  ;;  %v1065_v48 = vld [vmem:[#allocation13 + $0x20] sm:$0xff]  ;;  %v1108_v50 = vld [vmem:[#allocation13 + $0x178] sm:$0xff]  ;;  %v1123_v51 = vld [vmem:[#allocation13 + $0x1f0] sm:$0xff] }
 0x167   :  { %1037 = vmatpush2.msra.mxu1 %v887_v52  ;;  %967 = vmatprep.subr.mxu0 %v822_v53  ;;  %v1107_v52 = vld [vmem:[#allocation13 + $0x170] sm:$0xff]  ;;  %v1064_v53 = vld [vmem:[#allocation13 + $0x18] sm:$0xff] }
 0x168   :  { %1038 = vmatprep.subr.mxu1 %v886_v54  ;;  %968 = vmatpush2.msra.mxu0 %v821_v55  ;;  %v1122_v54 = vld [vmem:[#allocation13 + $0x1e8] sm:$0xff]  ;;  %v1079_v55 = vld [vmem:[#allocation13 + $0x90] sm:$0xff] }
 0x169   :  { %1039 = vmatpush2.msra.mxu1 %v885_v56  ;;  %969 = vmatprep.subr.mxu0 %v820_v57  ;;  %v1106_v56 = vld [vmem:[#allocation13 + $0x168] sm:$0xff]  ;;  %v1063_v57 = vld [vmem:[#allocation13 + $0x10] sm:$0xff] }
 0x16a   :  { %1040 = vmatprep.subr.mxu1 %v884_v58  ;;  %970 = vmatpush2.msra.mxu0 %v819_v59  ;;  %v1121_v58 = vld [vmem:[#allocation13 + $0x1e0] sm:$0xff]  ;;  %v1078_v59 = vld [vmem:[#allocation13 + $0x88] sm:$0xff] }
 0x16b   :  { %1041 = vmatpush2.msra.mxu1 %v883_v60  ;;  %971 = vmatprep.subr.mxu0 %v818_v61  ;;  %v1105_v60 = vld [vmem:[#allocation13 + $0x160] sm:$0xff]  ;;  %v1062_v61 = vld [vmem:[#allocation13 + $0x8] sm:$0xff] }
 0x16c   :  { %1042 = vmatprep.subr.mxu1 %v882_v62  ;;  %972 = vmatpush2.msra.mxu0 %v817_v63  ;;  %v1120_v62 = vld [vmem:[#allocation13 + $0x1d8] sm:$0xff]  ;;  %v1077_v63 = vld [vmem:[#allocation13 + $0x80] sm:$0xff] }
 0x16d   :  { %1043 = vmatpush2.msra.mxu1 %v881_v0  ;;  %973 = vmatprep.subr.mxu0 %v816_v1  ;;  %v1104_v0 = vld [vmem:[#allocation13 + $0x158] sm:$0xff]  ;;  %v1061_v1 = vld [vmem:[#allocation13] sm:$0xff] }
 0x16e   :  { %1044 = vmatprep.subr.mxu1 %v880_v2  ;;  %974 = vmatpush2.msra.mxu0 %v815_v3  ;;  %v1119_v2 = vld [vmem:[#allocation13 + $0x1d0] sm:$0xff] }
 0x16f   :  { %1045 = vmatpush2.msra.mxu1 %v879_v4  ;;  %975 = vmatprep.subr.mxu0 %v814_v5  ;;  %v1103_v3 = vld [vmem:[#allocation13 + $0x150] sm:$0xff]  ;;  %v1118_v4 = vld [vmem:[#allocation13 + $0x1c8] sm:$0xff] }
 0x170   :  { %1046 = vmatprep.subr.mxu1 %v878_v6  ;;  %976 = vmatpush2.msra.mxu0 %v813_v7  ;;  %v1102_v5 = vld [vmem:[#allocation13 + $0x148] sm:$0xff]  ;;  %v1117_v6 = vld [vmem:[#allocation13 + $0x1c0] sm:$0xff] }
 0x171   :  { %1047 = vmatpush2.msra.mxu1 %v877_v8  ;;  %977 = vmatprep.subr.mxu0 %v812_v9  ;;  %v1101_v7 = vld [vmem:[#allocation13 + $0x140] sm:$0xff]  ;;  %v1116_v8 = vld [vmem:[#allocation13 + $0x1b8] sm:$0xff] }
 0x172   :  { %1048 = vmatprep.subr.mxu1 %v876_v10  ;;  %978 = vmatpush2.msra.mxu0 %v811_v11  ;;  %v1100_v9 = vld [vmem:[#allocation13 + $0x138] sm:$0xff]  ;;  %v1115_v10 = vld [vmem:[#allocation13 + $0x1b0] sm:$0xff] }
 0x173   :  { %981 = vmatprep.mubr.f32.mxu0 %v1408_v12  ;;  %1049 = vmatpush2.msra.mxu1 %v875_v13  ;;  %v1099_v11 = vld [vmem:[#allocation13 + $0x130] sm:$0xff]  ;;  %v1114_v12 = vld [vmem:[#allocation13 + $0x1a8] sm:$0xff] }
 0x174   :  { %979 = vmatprep.subr.mxu0 %v810_v14  ;;  %1050 = vmatprep.subr.mxu1 %v874_v15  ;;  %v1098_v13 = vld [vmem:[#allocation13 + $0x128] sm:$0xff]  ;;  %v1113_v14 = vld [vmem:[#allocation13 + $0x1a0] sm:$0xff] }
 0x175   :  { %980 = vmatpush2.msra.mxu0 %v809_v16  ;;  %1051 = vmatpush2.msra.mxu1 %v873_v17  ;;  %v1097_v15 = vld [vmem:[#allocation13 + $0x120] sm:$0xff]  ;;  %v1112_v16 = vld [vmem:[#allocation13 + $0x198] sm:$0xff] }
 0x176   :  { %1052 = vmatprep.mubr.f32.mxu1 %v1410_v18  ;;  %982 = vmatmul.mubr.f32.vlgmr.msra.gmra.mxu0 %v1414_v21  ;;  %v1096_v17 = vld [vmem:[#allocation13 + $0x118] sm:$0xff]  ;;  %v1111_v18 = vld [vmem:[#allocation13 + $0x190] sm:$0xff]  ;;  %v1094_v21 = vld [vmem:[#allocation13 + $0x108] sm:$0xff] }
 0x177   :  { %1053 = vmatmul.mubr.f32.vlgmr.msra.gmra.mxu1 %v1412_v19  ;;  %1314 = vmatprep.subr.mxu0 %v1092_v20  ;;  %v1095_v19 = vld [vmem:[#allocation13 + $0x110] sm:$0xff]  ;;  %v1110_v20 = vld [vmem:[#allocation13 + $0x188] sm:$0xff] }
 0x178   :  { %1315 = vmatpush3.msra.mxu0 %v1076_v22  ;;  %1349 = vmatprep.subr.mxu1 %v1124_v49  ;;  %v1109_v22 = vld [vmem:[#allocation13 + $0x180] sm:$0xff] }
 0x179   :  { %1316 = vmatprep.subr.mxu0 %v1091_v23  ;;  %1350 = vmatpush3.msra.mxu1 %v1108_v50  ;;  %v1093_v23 = vld [vmem:[#allocation13 + $0x100] sm:$0xff] }
 0x17a   :  { %1317 = vmatpush3.msra.mxu0 %v1075_v24  ;;  %1351 = vmatprep.subr.mxu1 %v1123_v51  ;;  %v621_v24 = vld [vmem:[#allocation10] sm:$0x3] }
 0x17b   :  { %1318 = vmatprep.subr.mxu0 %v1090_v25  ;;  %1352 = vmatpush3.msra.mxu1 %v1107_v52  ;;  %v626_v25 = vrot.slane %v621_v24, %v1697_v38 }
 0x17c   :  { %1319 = vmatpush3.msra.mxu0 %v1074_v26  ;;  %1353 = vmatprep.subr.mxu1 %v1122_v54  ;;  %v630_v26 = vrot.slane %v621_v24, %v1703_v41 }
 0x17d   :  { %1320 = vmatprep.subr.mxu0 %v1089_v27  ;;  %1354 = vmatpush3.msra.mxu1 %v1106_v56  ;;  %v1273_v56 = vand.u32 127, %v157_v36 }
 0x17e   :  { %1321 = vmatpush3.msra.mxu0 %v1073_v28  ;;  %1355 = vmatprep.subr.mxu1 %v1121_v58 }
 0x17f   :  { %1322 = vmatprep.subr.mxu0 %v1088_v29  ;;  %1356 = vmatpush3.msra.mxu1 %v1105_v60  ;;  %vm1274_vm1 = vcmp.eq.s32.totalorder %v1273_v56, 5 }
 0x180   :  { %1323 = vmatpush3.msra.mxu0 %v1072_v30  ;;  %1357 = vmatprep.subr.mxu1 %v1120_v62 }
 0x181   :  { %1324 = vmatprep.subr.mxu0 %v1087_v31  ;;  %1358 = vmatpush3.msra.mxu1 %v1104_v0 }
 0x182   :  { %1325 = vmatpush3.msra.mxu0 %v1071_v32  ;;  %1359 = vmatprep.subr.mxu1 %v1119_v2 }
 0x183   :  { %1326 = vmatprep.subr.mxu0 %v1086_v33  ;;  %1360 = vmatpush3.msra.mxu1 %v1103_v3 }
 0x184   :  { %1327 = vmatpush3.msra.mxu0 %v1070_v34  ;;  %1361 = vmatprep.subr.mxu1 %v1118_v4 }
 0x185   :  { %1328 = vmatprep.subr.mxu0 %v1085_v35  ;;  %1362 = vmatpush3.msra.mxu1 %v1102_v5 }
 0x186   :  { %1329 = vmatpush3.msra.mxu0 %v1069_v37  ;;  %1363 = vmatprep.subr.mxu1 %v1117_v6 }
 0x187   :  { %1330 = vmatprep.subr.mxu0 %v1084_v39  ;;  %1364 = vmatpush3.msra.mxu1 %v1101_v7  ;;  %v905_v39 = vld [vmem:[%s1742_s6] sm:$0x3] }
 0x188   :  { %1331 = vmatpush3.msra.mxu0 %v1068_v42  ;;  %1365 = vmatprep.subr.mxu1 %v1116_v8  ;;  %v910_v42 = vrot.slane %v905_v39, %v1697_v38  ;;  %v1313_v38 = vld [vmem:[%s1744_s8] ss:$0 sm:$0xff]  ;;  %s1613_s8 = smov [#allocation14]  }
 0x189   :  { %1332 = vmatprep.subr.mxu0 %v1083_v43  ;;  %1366 = vmatpush3.msra.mxu1 %v1100_v9  ;;  %v914_v43 = vrot.slane %v905_v39, %v1703_v41  ;;  %s1297_s25 = sshll.u32 %s1613_s8, 4  ;;  %s1298_s25 = int_to_ptr.vmem [resolvable:$true] %s1297_s25 }
 0x18a   :  { %1333 = vmatpush3.msra.mxu0 %v1067_v44  ;;  %1367 = vmatprep.subr.mxu1 %v1115_v10  ;;  %s1569_s1 = scalar_lea.vmem %s1298_s25, 256  ;;  %p1574_p8 = scmp.lt.s32.totalorder %s1298_s25, %s1298_s25 }
 0x18b   :  { %1334 = vmatprep.subr.mxu0 %v1082_v45  ;;  %1368 = vmatpush3.msra.mxu1 %v1099_v11  ;;  %p1570_p7 = scmp.ne.s32.totalorder %s1298_s25, %s1569_s1  ;;  %p1575_p9 = scmp.lt.s32.totalorder %s1569_s1, %s1569_s1 }
 0x18c   :  { %1335 = vmatpush3.msra.mxu0 %v1066_v46  ;;  %1369 = vmatprep.subr.mxu1 %v1114_v12 }
 0x18d   :  { %1336 = vmatprep.subr.mxu0 %v1081_v47  ;;  %1370 = vmatpush3.msra.mxu1 %v1098_v13  ;;  %p1576_p10 = por %p1575_p9, %p1574_p8 }
 0x18e   :  { %1337 = vmatpush3.msra.mxu0 %v1065_v48  ;;  %1371 = vmatprep.subr.mxu1 %v1113_v14 }
 0x18f   :  { %1338 = vmatprep.subr.mxu0 %v1080_v40  ;;  %1372 = vmatpush3.msra.mxu1 %v1097_v15  ;;  %p1577_p11 = pnand %p1576_p10, %p1570_p7 }
 0x190   :  { %1339 = vmatpush3.msra.mxu0 %v1064_v53  ;;  %1373 = vmatprep.subr.mxu1 %v1112_v16 }
 0x191   :  { %1340 = vmatprep.subr.mxu0 %v1079_v55  ;;  %1374 = vmatpush3.msra.mxu1 %v1096_v17 }
 0x192   :  { %1341 = vmatpush3.msra.mxu0 %v1063_v57  ;;  %1375 = vmatprep.subr.mxu1 %v1111_v18 }
 0x193   :  { %1342 = vmatprep.subr.mxu0 %v1078_v59  ;;  %1376 = vmatpush3.msra.mxu1 %v1095_v19 }
 0x194   :  { %1343 = vmatpush3.msra.mxu0 %v1062_v61  ;;  %1377 = vmatprep.subr.mxu1 %v1110_v20 }
 0x195   :  { %1344 = vmatprep.subr.mxu0 %v1077_v63  ;;  %1378 = vmatpush3.msra.mxu1 %v1094_v21 }
 0x196   :  { %1345 = vmatpush3.msra.mxu0 %v1061_v1  ;;  %1379 = vmatprep.subr.mxu1 %v1109_v22 }
 0x197   :  { %1380 = vmatpush3.msra.mxu1 %v1093_v23 }
 0x1f5   :  { %v699_v27 = vpop.f32.mrf.mxu0 }
 0x1f6   :  { %v700_v28 = vadd.f32 %v699_v27, %v626_v25  ;;  %v770_v29 = vpop.f32.mrf.mxu1 }
 0x1f7   :  { %v701_v30 = vpop.f32.mrf.mxu0 }
 0x1f8   :  { %v702_v31 = vadd.f32 %v701_v30, %v630_v26  ;;  %v771_v32 = vadd.f32 %v770_v29, %v700_v28  ;;  %v772_v33 = vpop.f32.mrf.mxu1 }
 0x1fa   :  { %v773_v34 = vadd.f32 %v772_v33, %v702_v31 }
 0x1fc   :  { %1415 = vtanh.f32 %v773_v34 }
 0x1fd   :  { %1417 = vtanh.f32 %v771_v32 }
 0x209   :  { %v1416_v35 = vpop.eup %1415 }
 0x20a   :  { %v1418_v37 = vpop.eup %1417  ;;  %1196 = vmatprep.mubr.f32.mxu0 %v1416_v35 }
 0x20b   :  { %1197 = vmatmul.mubr.f32.vlgmr.msra.gmra.mxu0 %v1418_v37 }
 0x236   :  { %v983_v44 = vpop.f32.mrf.mxu0 }
 0x237   :  { %v984_v45 = vadd.f32 %v983_v44, %v910_v42  ;;  %v1054_v46 = vpop.f32.mrf.mxu1 }
 0x238   :  { %v985_v47 = vpop.f32.mrf.mxu0 }
 0x239   :  { %v986_v48 = vadd.f32 %v985_v47, %v914_v43  ;;  %v1055_v49 = vadd.f32 %v1054_v46, %v984_v45  ;;  %v1056_v50 = vpop.f32.mrf.mxu1 }
 0x23b   :  { %v1057_v51 = vadd.f32 %v1056_v50, %v986_v48 }
 0x23d   :  { %1419 = vtanh.f32 %v1057_v51 }
 0x23e   :  { %1421 = vtanh.f32 %v1055_v49 }
 0x24a   :  { %v1420_v40 = vpop.eup %1419 }
 0x24b   :  { %v1422_v52 = vpop.eup %1421  ;;  %1266 = vmatprep.mubr.f32.mxu1 %v1420_v40 }
 0x24c   :  { %1267 = vmatmul.mubr.f32.vlgmr.msra.gmra.mxu1 %v1422_v52 }
 0x2cb   :  { %v1346_v53 = vpop.f32.mrf.mxu0 }
 0x2cd   :  { %v1347_v54 = vpop.f32.mrf.mxu0 }
 0x2ce   :  { %v1348_v55 = vadd.f32 %v1347_v54, %v1346_v53 }
 0x2d0   :  { %v1199_v58 = vadd.f32 %v1348_v55, %v1313_v38 }
 0x30c   :  { %v1381_v41 = vpop.f32.mrf.mxu1 }
 0x30e   :  { %v1382_v57 = vpop.f32.mrf.mxu1 }
 0x30f   :  { %v1383_v59 = vadd.f32 %v1382_v57, %v1381_v41 }
 0x311   :  { %v1269_v60 = vadd.f32 %v1383_v59, %v1199_v58 }
 0x313   :  { %v1275_v61 = vsel %vm1274_vm1, -1e+09, %v1269_v60 }
 0x314   :  { %1276 = vmax.xlane.f32.xlu0 %v1275_v61 }
 0x39d   :  { %v1277_v62 = vpop.xlane.xlu0 %1276 }
 0x39e   :  { %v1278_v63 = vsub.f32 %v1275_v61, %v1277_v62 }
 0x3a0   :  { %v1279_v0 = vmul.f32 1.442695, %v1278_v63 }
 0x3a2   :  { %1423 = vpow2.f32 %v1279_v0 }
 0x3af   :  { %v1424_v1 = vpop.eup %1423 }
 0x3b0   :  { %1281 = vadd.xlane.f32.xlu0 %v1424_v1 }
 0x439   :  { %v1282_v2 = vpop.xlane.xlu0 %1281 }
 0x43a   :  { %1425 = vrcp.f32 %v1282_v2 }
 0x43b   :  { %1427 = vlog2.f32 %v1282_v2 }
 0x447   :  { %v1426_v3 = vpop.eup %1425 }
 0x448   :  { %v1428_v4 = vpop.eup %1427  ;;  %v1284_v36 = vmul.f32 %v1426_v3, %v1424_v1 }
 0x449   :  { %v1286_v5 = vmul.f32 0.6931472, %v1428_v4 }
 0x44a   :  { %1289 = vst [vmem:[#allocation14] sm:$0xff] %v1284_v36 }
 0x44b   :  { %v1287_v6 = vsub.f32 %v1278_v63, %v1286_v5 }
 0x44d   :  { %v1288_v7 = vsel %vm1274_vm1, %v1269_v60, %v1287_v6 }
 0x44e   :  { %1290 = vst [vmem:[#allocation14 + $0x8] sm:$0xff] %v1288_v7 }
 0x44f   :  { %1580 = shalt.err (!%p1577_p11)
}
 0x450   :  { %1300 = dma.vmem_to_hbm [thread:$0]  %s1298_s25, 256, %s1745_s9, [#allocation4]  }
 0x451   :  { %1597 = dma.done.wait [#allocation4], 256  }
 0x452   :  { %1598 = vsyncadd [#allocation4], 4294967040 }
 0x453   :  { %1304 = vsyncpa [#allocation3], 1 }
 0x454   :  { %1305 = vsyncpa [#allocation6], 1 }
 0x455   :  { %1306 = vsyncpa [#allocation9], 1 }
 0x456   :  { %1307 = vsyncpa [#allocation12], 1 }
 0x457   :  { %1308 = vsyncpa [#allocation4], 1 }

</bundles_post_ra>
